<compile_context>
chip_gen: v7x
topology: tpu7x:2x2x1
jax: 0.10.0
libtpu: 0.0.40
codegen_flags: <defaults>
</compile_context>

<pallas_src>
import functools

import jax
import jax.numpy as jnp
from jax import lax
from jax.experimental import pallas as pl
from jax.experimental.pallas import tpu as pltpu


def _gelu_tanh(x):
    # TODO(synk): PyTorch nn.GELU defaults to exact erf-GELU; the tanh
    # approximation used here (and in the reference) differs by ~1e-3.
    c = 0.7978845608028654  # sqrt(2/pi)
    return 0.5 * x * (1.0 + jnp.tanh(c * (x + 0.044715 * x * x * x)))


def _student_kernel(xp_ref, wct_ref, bc_ref, mask_ref, w1T_ref, b1_ref,
                    w2T_ref, b2_ref, outT_ref, *, wp, kh, kw):
    """Fused conv3x3 + ReLU -> global-avg-pool -> Linear -> GELU -> Linear.

    xp_ref   : (C, B*Hp*Wp + tail)  padded input, batch/space flattened on lanes
    wct_ref  : (kh*kw, Cf, C)       per-tap conv weights (transposed)
    bc_ref   : (Cf, 1)              conv bias
    mask_ref : (B, B*Hp*Wp)         per-batch pooling mask (1/(H*W) on valid anchors)
    w1T_ref  : (Hd, Cf),  b1_ref : (Hd, 1)
    w2T_ref  : (Dout, Hd), b2_ref : (Dout, 1)
    outT_ref : (Dout, B)
    """
    cf = wct_ref.shape[1]
    b_sz, npos = mask_ref.shape

    # --- encoder: 3x3 conv as kh*kw shifted MXU matmul-accumulates (f32 acc).
    # Anchor n = b*Hp*Wp + y*Wp + x reads input lane n + dy*Wp + dx, which
    # never leaves batch b's segment for valid (y, x); invalid anchors produce
    # garbage that the pooling mask zeroes out.
    acc = jnp.zeros((cf, npos), jnp.float32)
    for t in range(kh * kw):
        dy, dx = divmod(t, kw)
        off = dy * wp + dx
        acc = acc + jnp.dot(wct_ref[t], xp_ref[:, pl.ds(off, npos)],
                            preferred_element_type=jnp.float32)
    feat = jnp.maximum(acc + bc_ref[...], 0.0)                       # bias + ReLU

    # --- global average pool: masked lane reduction per batch (XLU, not MXU).
    col = lax.broadcasted_iota(jnp.int32, (1, b_sz), 1)
    pooledT = jnp.zeros((cf, b_sz), jnp.float32)
    for b in range(b_sz):
        pb = jnp.sum(feat * mask_ref[b:b + 1, :], axis=1, keepdims=True)  # (Cf, 1)
        pooledT = pooledT + jnp.where(col == b, pb, 0.0)

    # --- head MLP in the transposed (batch-on-lanes) layout.
    hT = jnp.dot(w1T_ref[...], pooledT,
                 preferred_element_type=jnp.float32) + b1_ref[...]       # (Hd, B)
    hT = _gelu_tanh(hT)
    oT = jnp.dot(w2T_ref[...], hT,
                 preferred_element_type=jnp.float32) + b2_ref[...]       # (Dout, B)
    outT_ref[...] = oT.astype(outT_ref.dtype)


@jax.jit
def student_forward(x_nchw, params):
    wc, bc, w1, b1, w2, b2 = (params[k] for k in ("wc", "bc", "w1", "b1", "w2", "b2"))
    B, C, H, W = x_nchw.shape
    KH, KW, _, Cf = wc.shape
    Hd = w1.shape[-1]
    Dout = w2.shape[-1]
    Hp, Wp = H + KH - 1, W + KW - 1          # "same" padding, stride-1 conv
    npos = B * Hp * Wp                       # conv anchors computed in kernel
    tail = (KH - 1) * Wp + (KW - 1)          # max tap offset -> zero tail pad

    # ---- glue (single fused XLA pass, ~input-sized): pad + flatten, once.
    xp = jnp.pad(x_nchw.astype(jnp.float32),
                 ((0, 0), (0, 0), (KH // 2, KH // 2), (KW // 2, KW // 2)))
    xp_flat = jnp.transpose(xp, (1, 0, 2, 3)).reshape(C, npos)       # (C, B*Hp*Wp)
    xp_flat = jnp.pad(xp_flat, ((0, 0), (0, tail)))                  # (C, npos+tail)

    # per-tap transposed conv weights: wct[t] = wc[dy, dx].T -> (Cf, C)
    wct = jnp.transpose(wc, (0, 1, 3, 2)).reshape(KH * KW, Cf, C).astype(jnp.float32)
    bcT = bc.reshape(Cf, 1).astype(jnp.float32)
    w1T = w1.T.astype(jnp.float32)                                   # (Hd, Cf)
    b1c = b1.reshape(Hd, 1).astype(jnp.float32)
    w2T = w2.T.astype(jnp.float32)                                   # (Dout, Hd)
    b2c = b2.reshape(Dout, 1).astype(jnp.float32)

    # pooling mask: anchor n belongs to batch n // (Hp*Wp) and is valid iff
    # its (y, x) lies inside the un-padded H x W window; weight = 1/(H*W).
    n = jnp.arange(npos, dtype=jnp.int32)
    yy = (n % (Hp * Wp)) // Wp
    xx = n % Wp
    valid = (yy < H) & (xx < W)
    mask = ((n[None, :] // (Hp * Wp) == jnp.arange(B, dtype=jnp.int32)[:, None])
            & valid[None, :]).astype(jnp.float32) / float(H * W)     # (B, npos)

    operands = (xp_flat, wct, bcT, mask, w1T, b1c, w2T, b2c)

    flops = (2 * Cf * C * npos * KH * KW          # conv matmul-accumulates
             + 3 * Cf * npos * B                  # pooling mask-mul + reduce
             + 2 * Hd * Cf * B + 2 * Dout * Hd * B)
    bytes_accessed = sum(a.size for a in operands) * 4 + Dout * B * 4

    vmem_spec = pl.BlockSpec(memory_space=pltpu.MemorySpace.VMEM)
    outT = pl.pallas_call(
        functools.partial(_student_kernel, wp=Wp, kh=KH, kw=KW),
        out_shape=jax.ShapeDtypeStruct((Dout, B), jnp.float32),
        in_specs=[vmem_spec] * len(operands),
        out_specs=vmem_spec,
        cost_estimate=pl.CostEstimate(flops=flops, transcendentals=Hd * B,
                                      bytes_accessed=bytes_accessed),
    )(*operands)

    return outT.T                                                    # (B, Dout), f32


def student_reference(x_nchw, params):
    """Pure-JAX reference with identical math (for the correctness check)."""
    wc, bc, w1, b1, w2, b2 = (params[k] for k in ("wc", "bc", "w1", "b1", "w2", "b2"))
    x = jnp.transpose(x_nchw, (0, 2, 3, 1))                          # NHWC
    feat = lax.conv_general_dilated(
        x, wc, window_strides=(1, 1), padding="SAME",
        dimension_numbers=("NHWC", "HWIO", "NHWC"))
    feat = jnp.maximum(feat + bc.reshape(1, 1, 1, -1), 0.0)
    pooled = jnp.mean(feat, axis=(1, 2))                             # (B, Cf)
    h = _gelu_tanh(pooled @ w1 + b1)
    return h @ w2 + b2


def init_params(key, c_in=4, c_feat=32, hidden=64, out_dim=16, kh=3, kw=3):
    ks = jax.random.split(key, 3)
    fan_c = kh * kw * c_in
    return {
        "wc": jax.random.normal(ks[0], (kh, kw, c_in, c_feat), jnp.float32)
              / jnp.sqrt(fan_c),
        "bc": jnp.linspace(-0.1, 0.1, c_feat, dtype=jnp.float32),
        "w1": jax.random.normal(ks[1], (c_feat, hidden), jnp.float32)
              / jnp.sqrt(c_feat),
        "b1": jnp.linspace(-0.05, 0.05, hidden, dtype=jnp.float32),
        "w2": jax.random.normal(ks[2], (hidden, out_dim), jnp.float32)
              / jnp.sqrt(hidden),
        "b2": jnp.zeros((out_dim,), jnp.float32),
    }


if __name__ == "__main__":
    key = jax.random.PRNGKey(0)
    k_x, k_p = jax.random.split(key)

    B, C, H, W = 2, 4, 16, 16
    x = jax.random.normal(k_x, (B, C, H, W), jnp.float32)            # NCHW like PyTorch
    params = init_params(k_p, c_in=C)

    out = jax.block_until_ready(student_forward(x, params))
    ref = jax.block_until_ready(student_reference(x, params))

    assert out.shape == (B, 16), out.shape
    assert bool(jnp.all(jnp.isfinite(out)))
    # everything is f32 now (f32 matmul accumulation) -> tight tolerance.
    assert jnp.allclose(out, ref, rtol=2e-3, atol=2e-3), (out, ref)

    print("KERNEL_OK")
</pallas_src>

<mosaic_0001>
module attributes {stable_mosaic.version = 11 : i64} {
  func.func @_student_kernel(%arg0: memref<4x686xf32, #tpu.memory_space<vmem>>, %arg1: memref<9x32x4xf32, #tpu.memory_space<vmem>>, %arg2: memref<32x1xf32, #tpu.memory_space<vmem>>, %arg3: memref<2x648xf32, #tpu.memory_space<vmem>>, %arg4: memref<64x32xf32, #tpu.memory_space<vmem>>, %arg5: memref<64x1xf32, #tpu.memory_space<vmem>>, %arg6: memref<16x64xf32, #tpu.memory_space<vmem>>, %arg7: memref<16x1xf32, #tpu.memory_space<vmem>>, %arg8: memref<16x2xf32, #tpu.memory_space<vmem>>) attributes {dimension_semantics = [], scalar_prefetch = 0 : i64, scratch_operands = 0 : i64, tpu.core_type = #tpu.core_type<tc>} {
    %cst = arith.constant 0.000000e+00 : f32
    %0 = vector.broadcast %cst : f32 to vector<32x648xf32>
    %c0 = arith.constant 0 : index
    %c0_0 = arith.constant 0 : index
    %c0_1 = arith.constant 0 : index
    %1 = vector.load %arg1[%c0, %c0_0, %c0_1] : memref<9x32x4xf32, #tpu.memory_space<vmem>>, vector<1x32x4xf32>
    %2 = vector.shape_cast %1 : vector<1x32x4xf32> to vector<32x4xf32>
    %c0_2 = arith.constant 0 : index
    %c0_3 = arith.constant 0 : index
    %3 = vector.load %arg0[%c0_2, %c0_3] : memref<4x686xf32, #tpu.memory_space<vmem>>, vector<4x648xf32>
    %cst_4 = arith.constant dense<0.000000e+00> : vector<32x648xf32>
    %4 = tpu.matmul %2, %3, %cst_4 {dimension_numbers = #tpu.dot_dimension_numbers<[1], [0], [0], [1], [0, 0, 1, 1], [], []>} : vector<32x4xf32>, vector<4x648xf32>, vector<32x648xf32> -> vector<32x648xf32>
    %5 = arith.addf %0, %4 : vector<32x648xf32>
    %c1 = arith.constant 1 : index
    %c0_5 = arith.constant 0 : index
    %c0_6 = arith.constant 0 : index
    %6 = vector.load %arg1[%c1, %c0_5, %c0_6] : memref<9x32x4xf32, #tpu.memory_space<vmem>>, vector<1x32x4xf32>
    %7 = vector.shape_cast %6 : vector<1x32x4xf32> to vector<32x4xf32>
    %c0_7 = arith.constant 0 : index
    %c1_8 = arith.constant 1 : index
    %8 = vector.load %arg0[%c0_7, %c1_8] : memref<4x686xf32, #tpu.memory_space<vmem>>, vector<4x648xf32>
    %cst_9 = arith.constant dense<0.000000e+00> : vector<32x648xf32>
    %9 = tpu.matmul %7, %8, %cst_9 {dimension_numbers = #tpu.dot_dimension_numbers<[1], [0], [0], [1], [0, 0, 1, 1], [], []>} : vector<32x4xf32>, vector<4x648xf32>, vector<32x648xf32> -> vector<32x648xf32>
    %10 = arith.addf %5, %9 : vector<32x648xf32>
    %c2 = arith.constant 2 : index
    %c0_10 = arith.constant 0 : index
    %c0_11 = arith.constant 0 : index
    %11 = vector.load %arg1[%c2, %c0_10, %c0_11] : memref<9x32x4xf32, #tpu.memory_space<vmem>>, vector<1x32x4xf32>
    %12 = vector.shape_cast %11 : vector<1x32x4xf32> to vector<32x4xf32>
    %c0_12 = arith.constant 0 : index
    %c2_13 = arith.constant 2 : index
    %13 = vector.load %arg0[%c0_12, %c2_13] : memref<4x686xf32, #tpu.memory_space<vmem>>, vector<4x648xf32>
    %cst_14 = arith.constant dense<0.000000e+00> : vector<32x648xf32>
    %14 = tpu.matmul %12, %13, %cst_14 {dimension_numbers = #tpu.dot_dimension_numbers<[1], [0], [0], [1], [0, 0, 1, 1], [], []>} : vector<32x4xf32>, vector<4x648xf32>, vector<32x648xf32> -> vector<32x648xf32>
    %15 = arith.addf %10, %14 : vector<32x648xf32>
    %c3 = arith.constant 3 : index
    %c0_15 = arith.constant 0 : index
    %c0_16 = arith.constant 0 : index
    %16 = vector.load %arg1[%c3, %c0_15, %c0_16] : memref<9x32x4xf32, #tpu.memory_space<vmem>>, vector<1x32x4xf32>
    %17 = vector.shape_cast %16 : vector<1x32x4xf32> to vector<32x4xf32>
    %c0_17 = arith.constant 0 : index
    %c18 = arith.constant 18 : index
    %18 = vector.load %arg0[%c0_17, %c18] : memref<4x686xf32, #tpu.memory_space<vmem>>, vector<4x648xf32>
    %cst_18 = arith.constant dense<0.000000e+00> : vector<32x648xf32>
    %19 = tpu.matmul %17, %18, %cst_18 {dimension_numbers = #tpu.dot_dimension_numbers<[1], [0], [0], [1], [0, 0, 1, 1], [], []>} : vector<32x4xf32>, vector<4x648xf32>, vector<32x648xf32> -> vector<32x648xf32>
    %20 = arith.addf %15, %19 : vector<32x648xf32>
    %c4 = arith.constant 4 : index
    %c0_19 = arith.constant 0 : index
    %c0_20 = arith.constant 0 : index
    %21 = vector.load %arg1[%c4, %c0_19, %c0_20] : memref<9x32x4xf32, #tpu.memory_space<vmem>>, vector<1x32x4xf32>
    %22 = vector.shape_cast %21 : vector<1x32x4xf32> to vector<32x4xf32>
    %c0_21 = arith.constant 0 : index
    %c19 = arith.constant 19 : index
    %23 = vector.load %arg0[%c0_21, %c19] : memref<4x686xf32, #tpu.memory_space<vmem>>, vector<4x648xf32>
    %cst_22 = arith.constant dense<0.000000e+00> : vector<32x648xf32>
    %24 = tpu.matmul %22, %23, %cst_22 {dimension_numbers = #tpu.dot_dimension_numbers<[1], [0], [0], [1], [0, 0, 1, 1], [], []>} : vector<32x4xf32>, vector<4x648xf32>, vector<32x648xf32> -> vector<32x648xf32>
    %25 = arith.addf %20, %24 : vector<32x648xf32>
    %c5 = arith.constant 5 : index
    %c0_23 = arith.constant 0 : index
    %c0_24 = arith.constant 0 : index
    %26 = vector.load %arg1[%c5, %c0_23, %c0_24] : memref<9x32x4xf32, #tpu.memory_space<vmem>>, vector<1x32x4xf32>
    %27 = vector.shape_cast %26 : vector<1x32x4xf32> to vector<32x4xf32>
    %c0_25 = arith.constant 0 : index
    %c20 = arith.constant 20 : index
    %28 = vector.load %arg0[%c0_25, %c20] : memref<4x686xf32, #tpu.memory_space<vmem>>, vector<4x648xf32>
    %cst_26 = arith.constant dense<0.000000e+00> : vector<32x648xf32>
    %29 = tpu.matmul %27, %28, %cst_26 {dimension_numbers = #tpu.dot_dimension_numbers<[1], [0], [0], [1], [0, 0, 1, 1], [], []>} : vector<32x4xf32>, vector<4x648xf32>, vector<32x648xf32> -> vector<32x648xf32>
    %30 = arith.addf %25, %29 : vector<32x648xf32>
    %c6 = arith.constant 6 : index
    %c0_27 = arith.constant 0 : index
    %c0_28 = arith.constant 0 : index
    %31 = vector.load %arg1[%c6, %c0_27, %c0_28] : memref<9x32x4xf32, #tpu.memory_space<vmem>>, vector<1x32x4xf32>
    %32 = vector.shape_cast %31 : vector<1x32x4xf32> to vector<32x4xf32>
    %c0_29 = arith.constant 0 : index
    %c36 = arith.constant 36 : index
    %33 = vector.load %arg0[%c0_29, %c36] : memref<4x686xf32, #tpu.memory_space<vmem>>, vector<4x648xf32>
    %cst_30 = arith.constant dense<0.000000e+00> : vector<32x648xf32>
    %34 = tpu.matmul %32, %33, %cst_30 {dimension_numbers = #tpu.dot_dimension_numbers<[1], [0], [0], [1], [0, 0, 1, 1], [], []>} : vector<32x4xf32>, vector<4x648xf32>, vector<32x648xf32> -> vector<32x648xf32>
    %35 = arith.addf %30, %34 : vector<32x648xf32>
    %c7 = arith.constant 7 : index
    %c0_31 = arith.constant 0 : index
    %c0_32 = arith.constant 0 : index
    %36 = vector.load %arg1[%c7, %c0_31, %c0_32] : memref<9x32x4xf32, #tpu.memory_space<vmem>>, vector<1x32x4xf32>
    %37 = vector.shape_cast %36 : vector<1x32x4xf32> to vector<32x4xf32>
    %c0_33 = arith.constant 0 : index
    %c37 = arith.constant 37 : index
    %38 = vector.load %arg0[%c0_33, %c37] : memref<4x686xf32, #tpu.memory_space<vmem>>, vector<4x648xf32>
    %cst_34 = arith.constant dense<0.000000e+00> : vector<32x648xf32>
    %39 = tpu.matmul %37, %38, %cst_34 {dimension_numbers = #tpu.dot_dimension_numbers<[1], [0], [0], [1], [0, 0, 1, 1], [], []>} : vector<32x4xf32>, vector<4x648xf32>, vector<32x648xf32> -> vector<32x648xf32>
    %40 = arith.addf %35, %39 : vector<32x648xf32>
    %c8 = arith.constant 8 : index
    %c0_35 = arith.constant 0 : index
    %c0_36 = arith.constant 0 : index
    %41 = vector.load %arg1[%c8, %c0_35, %c0_36] : memref<9x32x4xf32, #tpu.memory_space<vmem>>, vector<1x32x4xf32>
    %42 = vector.shape_cast %41 : vector<1x32x4xf32> to vector<32x4xf32>
    %c0_37 = arith.constant 0 : index
    %c38 = arith.constant 38 : index
    %43 = vector.load %arg0[%c0_37, %c38] : memref<4x686xf32, #tpu.memory_space<vmem>>, vector<4x648xf32>
    %cst_38 = arith.constant dense<0.000000e+00> : vector<32x648xf32>
    %44 = tpu.matmul %42, %43, %cst_38 {dimension_numbers = #tpu.dot_dimension_numbers<[1], [0], [0], [1], [0, 0, 1, 1], [], []>} : vector<32x4xf32>, vector<4x648xf32>, vector<32x648xf32> -> vector<32x648xf32>
    %45 = arith.addf %40, %44 : vector<32x648xf32>
    %c0_39 = arith.constant 0 : index
    %c0_40 = arith.constant 0 : index
    %46 = vector.load %arg2[%c0_39, %c0_40] : memref<32x1xf32, #tpu.memory_space<vmem>>, vector<32x1xf32>
    %47 = vector.broadcast %46 : vector<32x1xf32> to vector<32x648xf32>
    %48 = arith.addf %45, %47 : vector<32x648xf32>
    %cst_41 = arith.constant 0.000000e+00 : f32
    %49 = vector.broadcast %cst_41 : f32 to vector<32x648xf32>
    %50 = arith.maximumf %48, %49 : vector<32x648xf32>
    %51 = tpu.iota {dimensions = array<i32: 1>} : vector<1x2xi32>
    %cst_42 = arith.constant 0.000000e+00 : f32
    %52 = vector.broadcast %cst_42 : f32 to vector<32x2xf32>
    %c0_43 = arith.constant 0 : index
    %c0_44 = arith.constant 0 : index
    %53 = vector.load %arg3[%c0_43, %c0_44] : memref<2x648xf32, #tpu.memory_space<vmem>>, vector<1x648xf32>
    %54 = vector.broadcast %53 : vector<1x648xf32> to vector<32x648xf32>
    %55 = arith.mulf %50, %54 : vector<32x648xf32>
    %cst_45 = arith.constant dense<0.000000e+00> : vector<32xf32>
    %56 = vector.multi_reduction <add>, %55, %cst_45 [1] : vector<32x648xf32> to vector<32xf32>
    %57 = vector.shape_cast %56 : vector<32xf32> to vector<32x1xf32>
    %c0_i32 = arith.constant 0 : i32
    %58 = vector.broadcast %c0_i32 : i32 to vector<1x2xi32>
    %59 = arith.cmpi eq, %51, %58 : vector<1x2xi32>
    %cst_46 = arith.constant 0.000000e+00 : f32
    %60 = vector.shape_cast %59 : vector<1x2xi1> to vector<1x2xi1>
    %61 = vector.broadcast %60 : vector<1x2xi1> to vector<32x2xi1>
    %62 = vector.shape_cast %57 : vector<32x1xf32> to vector<32x1xf32>
    %63 = vector.broadcast %62 : vector<32x1xf32> to vector<32x2xf32>
    %64 = vector.broadcast %cst_46 : f32 to vector<32x2xf32>
    %65 = arith.select %61, %63, %64 : vector<32x2xi1>, vector<32x2xf32>
    %66 = arith.addf %52, %65 : vector<32x2xf32>
    %c1_47 = arith.constant 1 : index
    %c0_48 = arith.constant 0 : index
    %67 = vector.load %arg3[%c1_47, %c0_48] : memref<2x648xf32, #tpu.memory_space<vmem>>, vector<1x648xf32>
    %68 = vector.broadcast %67 : vector<1x648xf32> to vector<32x648xf32>
    %69 = arith.mulf %50, %68 : vector<32x648xf32>
    %cst_49 = arith.constant dense<0.000000e+00> : vector<32xf32>
    %70 = vector.multi_reduction <add>, %69, %cst_49 [1] : vector<32x648xf32> to vector<32xf32>
    %71 = vector.shape_cast %70 : vector<32xf32> to vector<32x1xf32>
    %c1_i32 = arith.constant 1 : i32
    %72 = vector.broadcast %c1_i32 : i32 to vector<1x2xi32>
    %73 = arith.cmpi eq, %51, %72 : vector<1x2xi32>
    %cst_50 = arith.constant 0.000000e+00 : f32
    %74 = vector.shape_cast %73 : vector<1x2xi1> to vector<1x2xi1>
    %75 = vector.broadcast %74 : vector<1x2xi1> to vector<32x2xi1>
    %76 = vector.shape_cast %71 : vector<32x1xf32> to vector<32x1xf32>
    %77 = vector.broadcast %76 : vector<32x1xf32> to vector<32x2xf32>
    %78 = vector.broadcast %cst_50 : f32 to vector<32x2xf32>
    %79 = arith.select %75, %77, %78 : vector<32x2xi1>, vector<32x2xf32>
    %80 = arith.addf %66, %79 : vector<32x2xf32>
    %c0_51 = arith.constant 0 : index
    %c0_52 = arith.constant 0 : index
    %81 = vector.load %arg4[%c0_51, %c0_52] : memref<64x32xf32, #tpu.memory_space<vmem>>, vector<64x32xf32>
    %cst_53 = arith.constant dense<0.000000e+00> : vector<64x2xf32>
    %82 = tpu.matmul %81, %80, %cst_53 {dimension_numbers = #tpu.dot_dimension_numbers<[1], [0], [0], [1], [0, 0, 1, 1], [], []>} : vector<64x32xf32>, vector<32x2xf32>, vector<64x2xf32> -> vector<64x2xf32>
    %c0_54 = arith.constant 0 : index
    %c0_55 = arith.constant 0 : index
    %83 = vector.load %arg5[%c0_54, %c0_55] : memref<64x1xf32, #tpu.memory_space<vmem>>, vector<64x1xf32>
    %84 = vector.broadcast %83 : vector<64x1xf32> to vector<64x2xf32>
    %85 = arith.addf %82, %84 : vector<64x2xf32>
    %cst_56 = arith.constant 5.000000e-01 : f32
    %86 = vector.broadcast %cst_56 : f32 to vector<64x2xf32>
    %87 = arith.mulf %86, %85 : vector<64x2xf32>
    %cst_57 = arith.constant 4.471500e-02 : f32
    %88 = vector.broadcast %cst_57 : f32 to vector<64x2xf32>
    %89 = arith.mulf %88, %85 : vector<64x2xf32>
    %90 = arith.mulf %89, %85 : vector<64x2xf32>
    %91 = arith.mulf %90, %85 : vector<64x2xf32>
    %92 = arith.addf %85, %91 : vector<64x2xf32>
    %cst_58 = arith.constant 0.797884583 : f32
    %93 = vector.broadcast %cst_58 : f32 to vector<64x2xf32>
    %94 = arith.mulf %93, %92 : vector<64x2xf32>
    %95 = math.tanh %94 : vector<64x2xf32>
    %cst_59 = arith.constant 1.000000e+00 : f32
    %96 = vector.broadcast %cst_59 : f32 to vector<64x2xf32>
    %97 = arith.addf %96, %95 : vector<64x2xf32>
    %98 = arith.mulf %87, %97 : vector<64x2xf32>
    %c0_60 = arith.constant 0 : index
    %c0_61 = arith.constant 0 : index
    %99 = vector.load %arg6[%c0_60, %c0_61] : memref<16x64xf32, #tpu.memory_space<vmem>>, vector<16x64xf32>
    %cst_62 = arith.constant dense<0.000000e+00> : vector<16x2xf32>
    %100 = tpu.matmul %99, %98, %cst_62 {dimension_numbers = #tpu.dot_dimension_numbers<[1], [0], [0], [1], [0, 0, 1, 1], [], []>} : vector<16x64xf32>, vector<64x2xf32>, vector<16x2xf32> -> vector<16x2xf32>
    %c0_63 = arith.constant 0 : index
    %c0_64 = arith.constant 0 : index
    %101 = vector.load %arg7[%c0_63, %c0_64] : memref<16x1xf32, #tpu.memory_space<vmem>>, vector<16x1xf32>
    %102 = vector.broadcast %101 : vector<16x1xf32> to vector<16x2xf32>
    %103 = arith.addf %100, %102 : vector<16x2xf32>
    %c0_65 = arith.constant 0 : index
    %c0_66 = arith.constant 0 : index
    %104 = vector.load %arg8[%c0_65, %c0_66] : memref<16x2xf32, #tpu.memory_space<vmem>>, vector<16x2xf32>
    tpu.vector_store %arg8[%c0_65, %c0_66], %103 {strides = array<i32>} : memref<16x2xf32, #tpu.memory_space<vmem>>, vector<16x2xf32>,
    return
  }
}

</mosaic_0001>

<bundles_post_ra>
// kernel: student_forward.1
= control target key start
LH: loop header
LB: loop body
LE: loop exit
PB: predicated region body
PF: predicated region fallthrough
CT: control target
= control target key end

     0   :  { %v4226_v1 = vmov 0.0   ;;  %s4227_s29 = smov 126   ;;  %s4228_s10 = smov 127   ;;  %vm78_vm0 = vcmask 1043456   ;;  %vm675_vm1 = vcmask 1031168   ;;  %vm65_vm2 = vcmask 31744   ;;  %s5311_s0 = inlined_call_operand.vmem [shape: f32[4,686], index: 0, kind: input, shape index: {}]   ;;  %s5312_s1 = inlined_call_operand.vmem [shape: f32[9,32,4], index: 1, kind: input, shape index: {}]   ;;  %s5313_s2 = inlined_call_operand.vmem [shape: f32[32,1], index: 2, kind: input, shape index: {}]   ;;  %s5314_s3 = inlined_call_operand.vmem [shape: f32[2,648], index: 3, kind: input, shape index: {}]   ;;  %s5315_s5 = inlined_call_operand.vmem [shape: f32[64,1], index: 5, kind: input, shape index: {}]   ;;  %s5316_s4 = inlined_call_operand.vmem [shape: f32[64,32], index: 4, kind: input, shape index: {}]   ;;  %s5317_s7 = inlined_call_operand.vmem [shape: f32[16,1], index: 7, kind: input, shape index: {}]   ;;  %s5318_s6 = inlined_call_operand.vmem [shape: f32[16,64], index: 6, kind: input, shape index: {}]   ;;  %s5319_s8 = inlined_call_operand.vmem [shape: f32[16,2], index: 8, kind: output, shape index: {}]  }
   0x1   :  { %v4284_v0 = vld [vmem:[%s5311_s0] sm:$0xff]  ;;  %769 = vmatprep.mubr.f32.mxu0 %v4226_v1  ;;  %155 = vmatprep.mubr.f32.mxu1 %v4226_v1  ;;  %v4299_v3 = vld [vmem:[%s5311_s0 + $0x8] sm:$0xff]  ;;  %v4305_v4 = vld [vmem:[%s5311_s0 + $0x10] sm:$0xff]  ;;  %s4229_s0 = smov 110   ;;  %s4230_s13 = smov 109   ;;  %vm59_vm3 = vcmask 1039360  }
   0x2   :  { %663 = vrot.lane.b32.xlu1 %v4284_v0, %s4227_s29  ;;  %v4292_v2 = vcombine.high %v4284_v0, %v4284_v0  ;;  %v4312_v5 = vcombine.high %v4305_v4, %v4305_v4  ;;  %v4319_v6 = vcombine.high %v4299_v3, %v4299_v3  ;;  %s4231_s14 = smov 108   ;;  %s4232_s15 = smov 92   ;;  %v4371_v12 = vld [vmem:[%s5312_s1 + $0x40] sm:$0xff]  ;;  %v4384_v18 = vld [vmem:[%s5312_s1 + $0x48] sm:$0xff]  ;;  %v4407_v23 = vld [vmem:[%s5312_s1 + $0x50] sm:$0xff]  ;;  %vm1022_vm4 = vcmask 900096  }
   0x3   :  { %s4233_s16 = smov 91   ;;  %s4234_s17 = smov 90   ;;  %v4389_v19 = vld [vmem:[%s5312_s1 + $0x20] sm:$0xff]  ;;  %v4412_v24 = vld [vmem:[%s5312_s1 + $0x28] sm:$0xff]  ;;  %v4426_v29 = vld [vmem:[%s5312_s1 + $0x58] sm:$0xff]  ;;  %vm1369_vm5 = vcmask 891904  }
   0x4   :  { %665 = vrot.lane.b32.xlu0 %v4292_v2, %s4227_s29  ;;  %v4431_v30 = vld [vmem:[%s5312_s1 + $0x30] sm:$0xff]  ;;  %v4448_v34 = vld [vmem:[%s5312_s1 + $0x38] sm:$0xff]  ;;  %v4492_v45 = vld [vmem:[%s5312_s1 + $0x60] sm:$0xff]  ;;  %vm1716_vm6 = vcmask 883712   ;;  %vm2063_vm7 = vcmask 752640   ;;  %vm2410_vm8 = vcmask 744448  }
   0x5   :  { %v4511_v50 = vld [vmem:[%s5312_s1 + $0x68] sm:$0xff]  ;;  %v4526_v53 = vld [vmem:[%s5312_s1 + $0x70] sm:$0xff]  ;;  %v4549_v58 = vld [vmem:[%s5312_s1 + $0x78] sm:$0xff]  ;;  %vm2757_vm9 = vcmask 736256   ;;  %vm3212_vm10 = vcmask 64512   ;;  %vm3408_vm11 = vcmask 261120  }
   0x6   :  { %49 = vrot.lane.b32.xlu1 %v4292_v2, %s4228_s10  ;;  %vm3624_vm14 = vcmask 523264   ;;  %vm3706_vm15 = vcmask 15360  }
   0x8   :  { %667 = vrot.lane.b32.xlu0 %v4299_v3, %s4227_s29 }
   0xa   :  { %47 = vrot.lane.b32.xlu1 %v4284_v0, %s4228_s10 }
   0xc   :  { %51 = vrot.lane.b32.xlu0 %v4299_v3, %s4228_s10 }
   0xe   :  { %673 = vrot.lane.b32.xlu1 %v4312_v5, %s4227_s29 }
  0x10   :  { %671 = vrot.lane.b32.xlu0 %v4305_v4, %s4227_s29 }
  0x12   :  { %55 = vrot.lane.b32.xlu1 %v4305_v4, %s4228_s10 }
  0x14   :  { %53 = vrot.lane.b32.xlu0 %v4319_v6, %s4228_s10 }
  0x16   :  { %1014 = vrot.lane.b32.xlu1 %v4299_v3, %s4229_s0 }
  0x18   :  { %1012 = vrot.lane.b32.xlu0 %v4292_v2, %s4229_s0 }
  0x1a   :  { %57 = vrot.lane.b32.xlu1 %v4312_v5, %s4228_s10 }
  0x1c   :  { %1010 = vrot.lane.b32.xlu0 %v4284_v0, %s4229_s0 }
  0x1e   :  { %1020 = vrot.lane.b32.xlu1 %v4312_v5, %s4229_s0 }
  0x20   :  { %1018 = vrot.lane.b32.xlu0 %v4305_v4, %s4229_s0 }
  0x22   :  { %1361 = vrot.lane.b32.xlu1 %v4299_v3, %s4230_s13 }
  0x24   :  { %1359 = vrot.lane.b32.xlu0 %v4292_v2, %s4230_s13 }
  0x26   :  { %1365 = vrot.lane.b32.xlu1 %v4305_v4, %s4230_s13 }
  0x28   :  { %1357 = vrot.lane.b32.xlu0 %v4284_v0, %s4230_s13 }
  0x2a   :  { %1706 = vrot.lane.b32.xlu1 %v4292_v2, %s4231_s14 }
  0x2c   :  { %1367 = vrot.lane.b32.xlu0 %v4312_v5, %s4230_s13 }
  0x2e   :  { %1704 = vrot.lane.b32.xlu1 %v4284_v0, %s4231_s14 }
  0x30   :  { %1708 = vrot.lane.b32.xlu0 %v4299_v3, %s4231_s14 }
  0x32   :  { %1712 = vrot.lane.b32.xlu1 %v4305_v4, %s4231_s14 }
  0x34   :  { %669 = vrot.lane.b32.xlu0 %v4319_v6, %s4227_s29 }
  0x36   :  { %1016 = vrot.lane.b32.xlu1 %v4319_v6, %s4229_s0 }
  0x38   :  { %1714 = vrot.lane.b32.xlu0 %v4312_v5, %s4231_s14 }
  0x3a   :  { %2055 = vrot.lane.b32.xlu1 %v4299_v3, %s4232_s15 }
  0x3c   :  { %2053 = vrot.lane.b32.xlu0 %v4292_v2, %s4232_s15 }
  0x3e   :  { %1363 = vrot.lane.b32.xlu1 %v4319_v6, %s4230_s13 }
  0x40   :  { %2051 = vrot.lane.b32.xlu0 %v4284_v0, %s4232_s15 }
  0x42   :  { %2061 = vrot.lane.b32.xlu1 %v4312_v5, %s4232_s15 }
  0x44   :  { %2059 = vrot.lane.b32.xlu0 %v4305_v4, %s4232_s15 }
  0x46   :  { %2400 = vrot.lane.b32.xlu1 %v4292_v2, %s4233_s16 }
  0x48   :  { %1710 = vrot.lane.b32.xlu0 %v4319_v6, %s4231_s14 }
  0x4a   :  { %2398 = vrot.lane.b32.xlu1 %v4284_v0, %s4233_s16 }
  0x4c   :  { %2402 = vrot.lane.b32.xlu0 %v4299_v3, %s4233_s16 }
  0x4e   :  { %2406 = vrot.lane.b32.xlu1 %v4305_v4, %s4233_s16 }
  0x50   :  { %2057 = vrot.lane.b32.xlu0 %v4319_v6, %s4232_s15 }
  0x52   :  { %2404 = vrot.lane.b32.xlu1 %v4319_v6, %s4233_s16 }
  0x54   :  { %2408 = vrot.lane.b32.xlu0 %v4312_v5, %s4233_s16 }
  0x56   :  { %2749 = vrot.lane.b32.xlu1 %v4299_v3, %s4234_s17 }
  0x58   :  { %2747 = vrot.lane.b32.xlu0 %v4292_v2, %s4234_s17 }
  0x5a   :  { %2751 = vrot.lane.b32.xlu1 %v4319_v6, %s4234_s17 }
  0x5c   :  { %2745 = vrot.lane.b32.xlu0 %v4284_v0, %s4234_s17 }
  0x5e   :  { %2755 = vrot.lane.b32.xlu1 %v4312_v5, %s4234_s17 }
  0x60   :  { %2753 = vrot.lane.b32.xlu0 %v4305_v4, %s4234_s17 }
  0x74   :  { %v664_v7 = vpop.permute.xlu1 %663 }
  0x76   :  { %v666_v8 = vpop.permute.xlu0 %665 }
  0x77   :  { %v676_v14 = vsel %vm675_vm1, %v664_v7, %v666_v8 }
  0x78   :  { %v50_v9 = vpop.permute.xlu1 %49 }
  0x7a   :  { %v4364_v10 = vpop.permute.xlu0 %667 }
  0x7b   :  { %v677_v11 = vsel %vm675_vm1, %v666_v8, %v4364_v10 }
  0x7c   :  { %3757 = vmatprep.subr.msk.mxu0 %vm78_vm0, %v677_v11  ;;  %v48_v13 = vpop.permute.xlu1 %47  ;;  %v31_v11 = vld [vmem:[%s5312_s1 + $0x10] sm:$0xff] }
  0x7d   :  { %3758 = vmatpush1.msk.msra.mxu0 %vm78_vm0, %v676_v14  ;;  %v60_v16 = vsel %vm59_vm3, %v48_v13, %v50_v9  ;;  %v4627_v13 = vld [vmem:[%s5312_s1 + $0x80] sm:$0xff] }
  0x7e   :  { %3759 = vmatmul.mubr.msk.f32.vlgmr.msra.gmra.mrb[0].mxu0 %vm65_vm2, %v4371_v12  ;;  %v52_v15 = vpop.permute.xlu0 %51 }
  0x7f   :  { %v61_v17 = vsel %vm59_vm3, %v50_v9, %v52_v15  ;;  %775 = vmatprep.mubr.f32.mxu0 %v4226_v1  ;;  %v30_v9 = vld [vmem:[%s5312_s1 + $0x8] sm:$0xff] }
  0x80   :  { %3717 = vmatprep.subr.msk.mxu1 %vm78_vm0, %v61_v17  ;;  %v674_v20 = vpop.permute.xlu1 %673  ;;  %v4646_v17 = vld [vmem:[%s5312_s1 + $0x88] sm:$0xff] }
  0x81   :  { %3718 = vmatpush1.msk.msra.mxu1 %vm78_vm0, %v60_v16  ;;  %3769 = vmatprep.subr.msk.mxu0 %vm78_vm0, %v674_v20 }
  0x82   :  { %3760 = vmatmul.mubr.msk.f32.gmra.mrb[2].mxu0 %vm65_vm2, %v4384_v18  ;;  %v4396_v21 = vpop.permute.xlu0 %671  ;;  %3719 = vmatmul.mubr.msk.f32.vlgmr.msra.gmra.mrb[0].mxu1 %vm65_vm2, %v4389_v19 }
  0x83   :  { %v680_v22 = vsel %vm675_vm1, %v4396_v21, %v674_v20  ;;  %161 = vmatprep.mubr.f32.mxu1 %v4226_v1  ;;  %781 = vmatprep.mubr.f32.mxu0 %v4226_v1 }
  0x84   :  { %3770 = vmatpush1.msk.msra.mxu0 %vm78_vm0, %v680_v22  ;;  %v56_v25 = vpop.permute.xlu1 %55  ;;  %v4713_v22 = vld [vmem:[%s5312_s1 + $0xa0] sm:$0xff] }
  0x86   :  { %3761 = vmatmul.mubr.msk.f32.gmra.mrb[4].mxu0 %vm65_vm2, %v4407_v23  ;;  %v54_v26 = vpop.permute.xlu0 %53  ;;  %3720 = vmatmul.mubr.msk.f32.gmra.mrb[2].mxu1 %vm65_vm2, %v4412_v24 }
  0x87   :  { %v62_v27 = vsel %vm59_vm3, %v52_v15, %v54_v26  ;;  %v63_v28 = vsel %vm59_vm3, %v54_v26, %v56_v25  ;;  %167 = vmatprep.mubr.f32.mxu1 %v4226_v1  ;;  %787 = vmatprep.mubr.f32.mxu0 %v4226_v1  ;;  %v4729_v26 = vld [vmem:[%s5312_s1 + $0xa8] sm:$0xff] }
  0x88   :  { %3723 = vmatprep.subr.msk.mxu1 %vm78_vm0, %v63_v28  ;;  %v4434_v31 = vpop.permute.xlu1 %1014  ;;  %v4746_v28 = vld [vmem:[%s5312_s1 + $0xb0] sm:$0xff] }
  0x89   :  { %3724 = vmatpush1.msk.msra.mxu1 %vm78_vm0, %v62_v27 }
  0x8a   :  { %3762 = vmatmul.mubr.msk.f32.gmra.mrb[6].mxu0 %vm65_vm2, %v4426_v29  ;;  %v1013_v32 = vpop.permute.xlu0 %1012  ;;  %3721 = vmatmul.mubr.msk.f32.gmra.mrb[4].mxu1 %vm65_vm2, %v4431_v30 }
  0x8b   :  { %v1024_v33 = vsel %vm1022_vm4, %v1013_v32, %v4434_v31  ;;  %173 = vmatprep.mubr.f32.mxu1 %v4226_v1  ;;  %947 = vmatprep.mubr.f32.mxu0 %v4226_v1 }
  0x8c   :  { %v58_v35 = vpop.permute.xlu1 %57  ;;  %3779 = vmatprep.subr.msk.mxu0 %vm78_vm0, %v1024_v33 }
  0x8d   :  { %3729 = vmatprep.subr.msk.mxu1 %vm78_vm0, %v58_v35  ;;  %v64_v38 = vsel %vm59_vm3, %v56_v25, %v58_v35  ;;  %v4822_v35 = vld [vmem:[%s5312_s1 + $0xc8] sm:$0xff] }
  0x8e   :  { %v1011_v36 = vpop.permute.xlu0 %1010  ;;  %3722 = vmatmul.mubr.msk.f32.gmra.mrb[6].mxu1 %vm65_vm2, %v4448_v34  ;;  %3771 = vmatmul.mubr.msk.f32.vlgmr.msra.gmra.mrb[8].mxu0 %vm65_vm2, %v4371_v12 }
  0x8f   :  { %v1023_v37 = vsel %vm1022_vm4, %v1011_v36, %v1013_v32  ;;  %244 = vmatprep.mubr.f32.mxu1 %v4226_v1  ;;  %953 = vmatprep.mubr.f32.mxu0 %v4226_v1 }
  0x90   :  { %3780 = vmatpush1.msk.msra.mxu0 %vm78_vm0, %v1023_v37  ;;  %v1021_v39 = vpop.permute.xlu1 %1020 }
  0x91   :  { %3791 = vmatprep.subr.msk.mxu0 %vm78_vm0, %v1021_v39 }
  0x92   :  { %v4462_v40 = vpop.permute.xlu0 %1018  ;;  %3725 = vmatmul.mubr.msk.f32.vlgmr.msra.gmra.mrb[8].mxu1 %vm65_vm2, %v4389_v19  ;;  %3772 = vmatmul.mubr.msk.f32.gmra.mrb[10].mxu0 %vm65_vm2, %v4384_v18 }
  0x93   :  { %3730 = vmatpush1.msk.msra.mxu1 %vm78_vm0, %v64_v38  ;;  %250 = vmatprep.mubr.f32.mxu1 %v4226_v1  ;;  %v1027_v47 = vsel %vm1022_vm4, %v4462_v40, %v1021_v39  ;;  %v4838_v38 = vld [vmem:[%s5312_s1 + $0xd0] sm:$0xff] }
  0x94   :  { %v4470_v41 = vpop.permute.xlu1 %1361  ;;  %959 = vmatprep.mubr.f32.mxu0 %v4226_v1  ;;  %3735 = vmatprep.subr.msk.mxu1 %vm78_vm0, %v4292_v2  ;;  %v29_v2 = vld [vmem:[%s5312_s1] sm:$0xff] }
  0x96   :  { %v1360_v42 = vpop.permute.xlu0 %1359  ;;  %3726 = vmatmul.mubr.msk.f32.gmra.mrb[10].mxu1 %vm65_vm2, %v4412_v24  ;;  %3773 = vmatmul.mubr.msk.f32.gmra.mrb[12].mxu0 %vm65_vm2, %v4407_v23 }
  0x97   :  { %256 = vmatprep.mubr.f32.mxu1 %v4226_v1  ;;  %965 = vmatprep.mubr.f32.mxu0 %v4226_v1  ;;  %v1371_v48 = vsel %vm1369_vm5, %v1360_v42, %v4470_v41 }
  0x98   :  { %v4481_v43 = vpop.permute.xlu1 %1365 }
  0x9a   :  { %v1358_v44 = vpop.permute.xlu0 %1357  ;;  %3727 = vmatmul.mubr.msk.f32.gmra.mrb[12].mxu1 %vm65_vm2, %v4431_v30  ;;  %3774 = vmatmul.mubr.msk.f32.gmra.mrb[14].mxu0 %vm65_vm2, %v4426_v29 }
  0x9b   :  { %262 = vmatprep.mubr.f32.mxu1 %v4226_v1  ;;  %1116 = vmatprep.mubr.f32.mxu0 %v4226_v1  ;;  %v1370_v62 = vsel %vm1369_vm5, %v1358_v44, %v1360_v42 }
  0x9c   :  { %v4494_v46 = vpop.permute.xlu1 %1706 }
  0x9e   :  { %v4500_v49 = vpop.permute.xlu0 %1367  ;;  %3728 = vmatmul.mubr.msk.f32.gmra.mrb[14].mxu1 %vm65_vm2, %v4448_v34  ;;  %3781 = vmatmul.mubr.msk.f32.vlgmr.msra.gmra.mrb[0].mxu0 %vm65_vm2, %v4492_v45 }
  0x9f   :  { %333 = vmatprep.mubr.f32.mxu1 %v4226_v1  ;;  %1122 = vmatprep.mubr.f32.mxu0 %v4226_v1  ;;  %v1374_v15 = vsel %vm1369_vm5, %v4481_v43, %v4500_v49 }
  0xa0   :  { %v4513_v51 = vpop.permute.xlu1 %1704  ;;  %3792 = vmatpush1.msk.msra.mxu0 %vm78_vm0, %v1027_v47 }
  0xa1   :  { %3801 = vmatprep.subr.msk.mxu0 %vm78_vm0, %v1371_v48  ;;  %v1717_v20 = vsel %vm1716_vm6, %v4513_v51, %v4494_v46  ;;  %v4235_v48 = vmov 0  }
  0xa2   :  { %v1709_v52 = vpop.permute.xlu0 %1708  ;;  %3731 = vmatmul.mubr.msk.f32.vlgmr.msra.gmra.mrb[16].mxu1 %vm65_vm2, %v4389_v19  ;;  %3782 = vmatmul.mubr.msk.f32.gmra.mrb[2].mxu0 %vm65_vm2, %v4511_v50  ;;  %v4659_v19 = vld [vmem:[%s5312_s1 + $0x90] sm:$0xff] }
  0xa3   :  { %339 = vmatprep.mubr.f32.mxu1 %v4226_v1  ;;  %1128 = vmatprep.mubr.f32.mxu0 %v4226_v1  ;;  %v1718_v16 = vsel %vm1716_vm6, %v4494_v46, %v1709_v52 }
  0xa4   :  { %v4528_v54 = vpop.permute.xlu1 %1712  ;;  %3736 = vmatpush1.msk.msra.mxu1 %vm78_vm0, %v4284_v0  ;;  %4205 = vset.pattern.permute.xlu0 %v4235_v48 }
  0xa5   :  { %3741 = vmatprep.subr.msk.mxu1 %vm78_vm0, %v4319_v6  ;;  %4206 = vset.pattern.permute.xlu1 %v4235_v48 }
  0xa6   :  { %v670_v55 = vpop.permute.xlu0 %669  ;;  %3732 = vmatmul.mubr.msk.f32.gmra.mrb[18].mxu1 %vm65_vm2, %v4412_v24  ;;  %3783 = vmatmul.mubr.msk.f32.gmra.mrb[4].mxu0 %vm65_vm2, %v4526_v53 }
  0xa7   :  { %v4540_v56 = vsel %vm675_vm1, %v4364_v10, %v670_v55  ;;  %v679_v57 = vsel %vm675_vm1, %v670_v55, %v4396_v21  ;;  %345 = vmatprep.mubr.f32.mxu1 %v4226_v1  ;;  %1134 = vmatprep.mubr.f32.mxu0 %v4226_v1  ;;  %v3863_v55 = vld [vmem:[%s5312_s1 + $0xe0] sm:$0xff] }
  0xa8   :  { %v4551_v59 = vpop.permute.xlu1 %1016 }
  0xa9   :  { %v4556_v60 = vsel %vm1022_vm4, %v4434_v31, %v4551_v59  ;;  %v1026_v21 = vsel %vm1022_vm4, %v4551_v59, %v4462_v40  ;;  %v4807_v31 = vld [vmem:[%s5312_s1 + $0xc0] sm:$0xff]  ;;  %v4851_v40 = vld [vmem:[%s5312_s1 + $0xd8] sm:$0xff] }
  0xaa   :  { %3733 = vmatmul.mubr.msk.f32.gmra.mrb[20].mxu1 %vm65_vm2, %v4431_v30  ;;  %3784 = vmatmul.mubr.msk.f32.gmra.mrb[6].mxu0 %vm65_vm2, %v4549_v58  ;;  %v4562_v61 = vpop.permute.xlu0 %1714 }
  0xab   :  { %351 = vmatprep.mubr.f32.mxu1 %v4226_v1  ;;  %1294 = vmatprep.mubr.f32.mxu0 %v4226_v1  ;;  %v1721_v24 = vsel %vm1716_vm6, %v4528_v54, %v4562_v61 }
  0xac   :  { %v4567_v63 = vpop.permute.xlu1 %2055 }
  0xae   :  { %3734 = vmatmul.mubr.msk.f32.gmra.mrb[22].mxu1 %vm65_vm2, %v4448_v34  ;;  %3793 = vmatmul.mubr.msk.f32.vlgmr.msra.gmra.mrb[8].mxu0 %vm65_vm2, %v4492_v45  ;;  %v4573_v0 = vpop.permute.xlu0 %2053 }
  0xaf   :  { %3802 = vmatpush1.msk.msra.mxu0 %vm78_vm0, %v1370_v62  ;;  %446 = vmatprep.mubr.f32.mxu1 %v4226_v1  ;;  %v2065_v25 = vsel %vm2063_vm7, %v4573_v0, %v4567_v63 }
  0xb0   :  { %1300 = vmatprep.mubr.f32.mxu0 %v4226_v1  ;;  %v4581_v6 = vpop.permute.xlu1 %1363  ;;  %3813 = vmatprep.subr.msk.mxu0 %vm78_vm0, %v4500_v49  ;;  %v3078_v49 = vld [vmem:[%s5313_s2] sm:$0xff] }
  0xb1   :  { %v4588_v7 = vsel %vm1369_vm5, %v4470_v41, %v4581_v6  ;;  %v1373_v27 = vsel %vm1369_vm5, %v4581_v6, %v4481_v43  ;;  %3084 = vperm.xlu0 %4205, %v3078_v49  }
  0xb2   :  { %3737 = vmatmul.mubr.msk.f32.vlgmr.msra.gmra.mrb[0].mxu1 %vm65_vm2, %v29_v2  ;;  %3794 = vmatmul.mubr.msk.f32.gmra.mrb[10].mxu0 %vm65_vm2, %v4511_v50  ;;  %v4593_v8 = vpop.permute.xlu0 %2051 }
  0xb3   :  { %452 = vmatprep.mubr.f32.mxu1 %v4226_v1  ;;  %1306 = vmatprep.mubr.f32.mxu0 %v4226_v1 }
  0xb4   :  { %3742 = vmatpush1.msk.msra.mxu1 %vm78_vm0, %v4299_v3  ;;  %v2062_v30 = vpop.permute.xlu1 %2061 }
  0xb5   :  { %3747 = vmatprep.subr.msk.mxu1 %vm78_vm0, %v4312_v5  ;;  %v32_v5 = vld [vmem:[%s5312_s1 + $0x18] sm:$0xff] }
  0xb6   :  { %3738 = vmatmul.mubr.msk.f32.gmra.mrb[2].mxu1 %vm65_vm2, %v30_v9  ;;  %3795 = vmatmul.mubr.msk.f32.gmra.mrb[12].mxu0 %vm65_vm2, %v4526_v53  ;;  %v4607_v10 = vpop.permute.xlu0 %2059 }
  0xb7   :  { %458 = vmatprep.mubr.f32.mxu1 %v4226_v1  ;;  %1312 = vmatprep.mubr.f32.mxu0 %v4226_v1  ;;  %v2068_v32 = vsel %vm2063_vm7, %v4607_v10, %v2062_v30 }
  0xb8   :  { %v2401_v33 = vpop.permute.xlu1 %2400 }
  0xba   :  { %3739 = vmatmul.mubr.msk.f32.gmra.mrb[4].mxu1 %vm65_vm2, %v31_v11  ;;  %3796 = vmatmul.mubr.msk.f32.gmra.mrb[14].mxu0 %vm65_vm2, %v4549_v58  ;;  %v4617_v3 = vpop.permute.xlu0 %1710 }
  0xbb   :  { %464 = vmatprep.mubr.f32.mxu1 %v4226_v1  ;;  %1463 = vmatprep.mubr.f32.mxu0 %v4226_v1  ;;  %v4631_v14 = vsel %vm1716_vm6, %v1709_v52, %v4617_v3 }
  0xbc   :  { %v2399_v39 = vpop.permute.xlu1 %2398 }
  0xbd   :  { %v2411_v42 = vsel %vm2410_vm8, %v2399_v39, %v2401_v33 }
  0xbe   :  { %3740 = vmatmul.mubr.msk.f32.gmra.mrb[6].mxu1 %vm65_vm2, %v32_v5  ;;  %3803 = vmatmul.mubr.msk.f32.vlgmr.msra.gmra.mrb[0].mxu0 %vm65_vm2, %v4627_v13 }
  0xbf   :  { %535 = vmatprep.mubr.f32.mxu1 %v4226_v1  ;;  %1469 = vmatprep.mubr.f32.mxu0 %v4226_v1 }
  0xc0   :  { %3814 = vmatpush1.msk.msra.mxu0 %vm78_vm0, %v1374_v15  ;;  %v2407_v41 = vpop.permute.xlu1 %2406 }
  0xc1   :  { %3823 = vmatprep.subr.msk.mxu0 %vm78_vm0, %v1718_v16 }
  0xc2   :  { %3743 = vmatmul.mubr.msk.f32.vlgmr.msra.gmra.mrb[8].mxu1 %vm65_vm2, %v29_v2  ;;  %3804 = vmatmul.mubr.msk.f32.gmra.mrb[2].mxu0 %vm65_vm2, %v4646_v17 }
  0xc3   :  { %3748 = vmatpush1.msk.msra.mxu1 %vm78_vm0, %v4305_v4  ;;  %541 = vmatprep.mubr.f32.mxu1 %v4226_v1  ;;  %v4671_v4 = vld [vmem:[%s5312_s1 + $0x98] sm:$0xff] }
  0xc4   :  { %3763 = vmatprep.subr.msk.mxu1 %vm78_vm0, %v679_v57  ;;  %1475 = vmatprep.mubr.f32.mxu0 %v4226_v1  ;;  %v2405_v44 = vpop.permute.xlu1 %2404 }
  0xc6   :  { %3744 = vmatmul.mubr.msk.f32.gmra.mrb[10].mxu1 %vm65_vm2, %v30_v9  ;;  %3805 = vmatmul.mubr.msk.f32.gmra.mrb[4].mxu0 %vm65_vm2, %v4659_v19 }
  0xc7   :  { %547 = vmatprep.mubr.f32.mxu1 %v4226_v1  ;;  %1481 = vmatprep.mubr.f32.mxu0 %v4226_v1 }
  0xc8   :  { %v2750_v52 = vpop.permute.xlu1 %2749 }
  0xca   :  { %3745 = vmatmul.mubr.msk.f32.gmra.mrb[12].mxu1 %vm65_vm2, %v31_v11  ;;  %3806 = vmatmul.mubr.msk.f32.gmra.mrb[6].mxu0 %vm65_vm2, %v4671_v4 }
  0xcb   :  { %553 = vmatprep.mubr.f32.mxu1 %v4226_v1  ;;  %1641 = vmatprep.mubr.f32.mxu0 %v4226_v1 }
  0xcc   :  { %v2752_v59 = vpop.permute.xlu1 %2751 }
  0xce   :  { %3746 = vmatmul.mubr.msk.f32.gmra.mrb[14].mxu1 %vm65_vm2, %v32_v5  ;;  %3815 = vmatmul.mubr.msk.f32.vlgmr.msra.gmra.mrb[8].mxu0 %vm65_vm2, %v4627_v13 }
  0xcf   :  { %3824 = vmatpush1.msk.msra.mxu0 %vm78_vm0, %v1717_v20  ;;  %624 = vmatprep.mubr.f32.mxu1 %v4226_v1 }
  0xd0   :  { %1647 = vmatprep.mubr.f32.mxu0 %v4226_v1  ;;  %3835 = vmatprep.subr.msk.mxu0 %vm78_vm0, %v4562_v61  ;;  %v2756_v6 = vpop.permute.xlu1 %2755 }
  0xd2   :  { %3749 = vmatmul.mubr.msk.f32.vlgmr.msra.gmra.mrb[16].mxu1 %vm65_vm2, %v29_v2  ;;  %3816 = vmatmul.mubr.msk.f32.gmra.mrb[10].mxu0 %vm65_vm2, %v4646_v17 }
  0xd3   :  { %3764 = vmatpush1.msk.msra.mxu1 %vm78_vm0, %v4540_v56  ;;  %630 = vmatprep.mubr.f32.mxu1 %v4226_v1 }
  0xd4   :  { %3785 = vmatprep.subr.msk.mxu1 %vm78_vm0, %v1026_v21  ;;  %1653 = vmatprep.mubr.f32.mxu0 %v4226_v1 }
  0xd6   :  { %3750 = vmatmul.mubr.msk.f32.gmra.mrb[18].mxu1 %vm65_vm2, %v30_v9  ;;  %3817 = vmatmul.mubr.msk.f32.gmra.mrb[12].mxu0 %vm65_vm2, %v4659_v19 }
  0xd7   :  { %636 = vmatprep.mubr.f32.mxu1 %v4226_v1  ;;  %1659 = vmatprep.mubr.f32.mxu0 %v4226_v1 }
  0xda   :  { %3751 = vmatmul.mubr.msk.f32.gmra.mrb[20].mxu1 %vm65_vm2, %v31_v11  ;;  %3818 = vmatmul.mubr.msk.f32.gmra.mrb[14].mxu0 %vm65_vm2, %v4671_v4  ;;  %v3887_v11 = vld [vmem:[%s5312_s1 + $0x110] sm:$0xff] }
  0xdb   :  { %642 = vmatprep.mubr.f32.mxu1 %v4226_v1  ;;  %1810 = vmatprep.mubr.f32.mxu0 %v4226_v1 }
  0xde   :  { %3752 = vmatmul.mubr.msk.f32.gmra.mrb[22].mxu1 %vm65_vm2, %v32_v5  ;;  %3825 = vmatmul.mubr.msk.f32.vlgmr.msra.gmra.mrb[0].mxu0 %vm65_vm2, %v4713_v22 }
  0xdf   :  { %858 = vmatprep.mubr.f32.mxu1 %v4226_v1  ;;  %1816 = vmatprep.mubr.f32.mxu0 %v4226_v1 }
  0xe0   :  { %3836 = vmatpush1.msk.msra.mxu0 %vm78_vm0, %v1721_v24 }
  0xe1   :  { %3845 = vmatprep.subr.msk.mxu0 %vm78_vm0, %v2065_v25 }
  0xe2   :  { %3765 = vmatmul.mubr.msk.f32.vlgmr.msra.gmra.mrb[8].mxu1 %vm65_vm2, %v4371_v12  ;;  %3826 = vmatmul.mubr.msk.f32.gmra.mrb[2].mxu0 %vm65_vm2, %v4729_v26  ;;  %v4759_v12 = vld [vmem:[%s5312_s1 + $0xb8] sm:$0xff] }
  0xe3   :  { %3786 = vmatpush1.msk.msra.mxu1 %vm78_vm0, %v4556_v60  ;;  %864 = vmatprep.mubr.f32.mxu1 %v4226_v1  ;;  %v3864_v60 = vld [vmem:[%s5312_s1 + $0xe8] sm:$0xff] }
  0xe4   :  { %3807 = vmatprep.subr.msk.mxu1 %vm78_vm0, %v1373_v27  ;;  %1822 = vmatprep.mubr.f32.mxu0 %v4226_v1 }
  0xe6   :  { %3766 = vmatmul.mubr.msk.f32.gmra.mrb[10].mxu1 %vm65_vm2, %v4384_v18  ;;  %3827 = vmatmul.mubr.msk.f32.gmra.mrb[4].mxu0 %vm65_vm2, %v4746_v28  ;;  %v2064_v18 = vsel %vm2063_vm7, %v4593_v8, %v4573_v0  ;;  %v3866_v0 = vld [vmem:[%s5312_s1 + $0xf8] sm:$0xff]  ;;  %v3885_v8 = vld [vmem:[%s5312_s1 + $0x100] sm:$0xff] }
  0xe7   :  { %870 = vmatprep.mubr.f32.mxu1 %v4226_v1  ;;  %1828 = vmatprep.mubr.f32.mxu0 %v4226_v1 }
  0xea   :  { %3767 = vmatmul.mubr.msk.f32.gmra.mrb[12].mxu1 %vm65_vm2, %v4407_v23  ;;  %3828 = vmatmul.mubr.msk.f32.gmra.mrb[6].mxu0 %vm65_vm2, %v4759_v12  ;;  %v1720_v23 = vsel %vm1716_vm6, %v4617_v3, %v4528_v54  ;;  %v3081_v54 = vld [vmem:[%s5313_s2 + $0x18] sm:$0xff] }
  0xeb   :  { %876 = vmatprep.mubr.f32.mxu1 %v4226_v1  ;;  %1988 = vmatprep.mubr.f32.mxu0 %v4226_v1  ;;  %v3888_v3 = vld [vmem:[%s5312_s1 + $0x118] sm:$0xff] }
  0xec   :  { %3099 = vperm.xlu0 %4205, %v3081_v54  }
  0xee   :  { %3768 = vmatmul.mubr.msk.f32.gmra.mrb[14].mxu1 %vm65_vm2, %v4426_v29  ;;  %3837 = vmatmul.mubr.msk.f32.vlgmr.msra.gmra.mrb[8].mxu0 %vm65_vm2, %v4713_v22  ;;  %v4796_v29 = vpop.permute.xlu0 %2402 }
  0xef   :  { %3846 = vmatpush1.msk.msra.mxu0 %vm78_vm0, %v2064_v18  ;;  %1205 = vmatprep.mubr.f32.mxu1 %v4226_v1  ;;  %v2412_v34 = vsel %vm2410_vm8, %v2401_v33, %v4796_v29  ;;  %v2413_v62 = vsel %vm2410_vm8, %v4796_v29, %v2405_v44 }
  0xf0   :  { %1994 = vmatprep.mubr.f32.mxu0 %v4226_v1  ;;  %3857 = vmatprep.subr.msk.mxu0 %vm78_vm0, %v2062_v30  ;;  %v3152_v30 = vld [vmem:[%s5314_s3] ss:$2 sm:$0x3f] }
  0xf2   :  { %3787 = vmatmul.mubr.msk.f32.vlgmr.msra.gmra.mrb[8].mxu1 %vm65_vm2, %v4492_v45  ;;  %3838 = vmatmul.mubr.msk.f32.gmra.mrb[10].mxu0 %vm65_vm2, %v4729_v26  ;;  %v2058_v36 = vpop.permute.xlu0 %2057  ;;  %v2414_v45 = vsel %vm2410_vm8, %v2405_v44, %v2407_v41 }
  0xf3   :  { %3808 = vmatpush1.msk.msra.mxu1 %vm78_vm0, %v4588_v7  ;;  %1211 = vmatprep.mubr.f32.mxu1 %v4226_v1  ;;  %v2067_v37 = vsel %vm2063_vm7, %v2058_v36, %v4607_v10  ;;  %v2066_v46 = vsel %vm2063_vm7, %v4567_v63, %v2058_v36  ;;  %v3865_v63 = vld [vmem:[%s5312_s1 + $0xf0] sm:$0xff]  ;;  %v2760_v7 = vsel %vm2757_vm9, %v2750_v52, %v2752_v59  ;;  %v3886_v10 = vld [vmem:[%s5312_s1 + $0x108] sm:$0xff] }
  0xf4   :  { %3829 = vmatprep.subr.msk.mxu1 %vm78_vm0, %v1720_v23  ;;  %2000 = vmatprep.mubr.f32.mxu0 %v4226_v1 }
  0xf6   :  { %3788 = vmatmul.mubr.msk.f32.gmra.mrb[10].mxu1 %vm65_vm2, %v4511_v50  ;;  %3839 = vmatmul.mubr.msk.f32.gmra.mrb[12].mxu0 %vm65_vm2, %v4746_v28  ;;  %v2409_v43 = vpop.permute.xlu0 %2408  ;;  %v3079_v50 = vld [vmem:[%s5313_s2 + $0x8] sm:$0xff] }
  0xf7   :  { %1217 = vmatprep.mubr.f32.mxu1 %v4226_v1  ;;  %2006 = vmatprep.mubr.f32.mxu0 %v4226_v1  ;;  %v2415_v56 = vsel %vm2410_vm8, %v2407_v41, %v2409_v43 }
  0xf8   :  { %3089 = vperm.xlu1 %4206, %v3079_v50  }
  0xfa   :  { %3789 = vmatmul.mubr.msk.f32.gmra.mrb[12].mxu1 %vm65_vm2, %v4526_v53  ;;  %3840 = vmatmul.mubr.msk.f32.gmra.mrb[14].mxu0 %vm65_vm2, %v4759_v12  ;;  %v2748_v47 = vpop.permute.xlu0 %2747  ;;  %v3080_v53 = vld [vmem:[%s5313_s2 + $0x10] sm:$0xff] }
  0xfb   :  { %1223 = vmatprep.mubr.f32.mxu1 %v4226_v1  ;;  %2157 = vmatprep.mubr.f32.mxu0 %v4226_v1  ;;  %v2759_v57 = vsel %vm2757_vm9, %v2748_v47, %v2750_v52 }
  0xfc   :  { %3094 = vperm.xlu1 %4206, %v3080_v53  }
  0xfe   :  { %3790 = vmatmul.mubr.msk.f32.gmra.mrb[14].mxu1 %vm65_vm2, %v4549_v58  ;;  %3847 = vmatmul.mubr.msk.f32.vlgmr.msra.gmra.mrb[0].mxu0 %vm65_vm2, %v4807_v31  ;;  %v2746_v51 = vpop.permute.xlu0 %2745 }
  0xff   :  { %1552 = vmatprep.mubr.f32.mxu1 %v4226_v1  ;;  %2163 = vmatprep.mubr.f32.mxu0 %v4226_v1  ;;  %v2758_v2 = vsel %vm2757_vm9, %v2746_v51, %v2748_v47 }
 0x100   :  { %3858 = vmatpush1.msk.msra.mxu0 %vm78_vm0, %v2068_v32 }
 0x101   :  { %3867 = vmatprep.subr.msk.mxu0 %vm78_vm0, %v2412_v34 }
 0x102   :  { %3809 = vmatmul.mubr.msk.f32.vlgmr.msra.gmra.mrb[8].mxu1 %vm65_vm2, %v4627_v13  ;;  %3848 = vmatmul.mubr.msk.f32.gmra.mrb[2].mxu0 %vm65_vm2, %v4822_v35  ;;  %v2754_v58 = vpop.permute.xlu0 %2753 }
 0x103   :  { %3830 = vmatpush1.msk.msra.mxu1 %vm78_vm0, %v4631_v14  ;;  %1558 = vmatprep.mubr.f32.mxu1 %v4226_v1  ;;  %v2761_v61 = vsel %vm2757_vm9, %v2752_v59, %v2754_v58  ;;  %v2762_v9 = vsel %vm2757_vm9, %v2754_v58, %v2756_v6 }
 0x104   :  { %3851 = vmatprep.subr.msk.mxu1 %vm78_vm0, %v2067_v37  ;;  %2169 = vmatprep.mubr.f32.mxu0 %v4226_v1 }
 0x106   :  { %3810 = vmatmul.mubr.msk.f32.gmra.mrb[10].mxu1 %vm65_vm2, %v4646_v17  ;;  %3849 = vmatmul.mubr.msk.f32.gmra.mrb[4].mxu0 %vm65_vm2, %v4838_v38 }
 0x107   :  { %1564 = vmatprep.mubr.f32.mxu1 %v4226_v1  ;;  %2175 = vmatprep.mubr.f32.mxu0 %v4226_v1 }
 0x10a   :  { %3811 = vmatmul.mubr.msk.f32.gmra.mrb[12].mxu1 %vm65_vm2, %v4659_v19  ;;  %3850 = vmatmul.mubr.msk.f32.gmra.mrb[6].mxu0 %vm65_vm2, %v4851_v40 }
 0x10b   :  { %1570 = vmatprep.mubr.f32.mxu1 %v4226_v1  ;;  %2335 = vmatprep.mubr.f32.mxu0 %v4226_v1 }
 0x10e   :  { %3812 = vmatmul.mubr.msk.f32.gmra.mrb[14].mxu1 %vm65_vm2, %v4671_v4  ;;  %3859 = vmatmul.mubr.msk.f32.vlgmr.msra.gmra.mrb[8].mxu0 %vm65_vm2, %v4807_v31 }
 0x10f   :  { %3868 = vmatpush1.msk.msra.mxu0 %vm78_vm0, %v2411_v42  ;;  %1899 = vmatprep.mubr.f32.mxu1 %v4226_v1 }
 0x110   :  { %2341 = vmatprep.mubr.f32.mxu0 %v4226_v1  ;;  %3879 = vmatprep.subr.msk.mxu0 %vm78_vm0, %v2409_v43 }
 0x112   :  { %3831 = vmatmul.mubr.msk.f32.vlgmr.msra.gmra.mrb[8].mxu1 %vm65_vm2, %v4713_v22  ;;  %3860 = vmatmul.mubr.msk.f32.gmra.mrb[10].mxu0 %vm65_vm2, %v4822_v35 }
 0x113   :  { %3852 = vmatpush1.msk.msra.mxu1 %vm78_vm0, %v2066_v46  ;;  %1905 = vmatprep.mubr.f32.mxu1 %v4226_v1 }
 0x114   :  { %2347 = vmatprep.mubr.f32.mxu0 %v4226_v1  ;;  %3873 = vmatprep.subr.msk.mxu1 %vm78_vm0, %v2414_v45 }
 0x116   :  { %3832 = vmatmul.mubr.msk.f32.gmra.mrb[10].mxu1 %vm65_vm2, %v4729_v26  ;;  %3861 = vmatmul.mubr.msk.f32.gmra.mrb[12].mxu0 %vm65_vm2, %v4838_v38 }
 0x117   :  { %1911 = vmatprep.mubr.f32.mxu1 %v4226_v1  ;;  %2353 = vmatprep.mubr.f32.mxu0 %v4226_v1 }
 0x11a   :  { %3833 = vmatmul.mubr.msk.f32.gmra.mrb[12].mxu1 %vm65_vm2, %v4746_v28  ;;  %3862 = vmatmul.mubr.msk.f32.gmra.mrb[14].mxu0 %vm65_vm2, %v4851_v40  ;;  %v3150_v28 = vlaneseq }
 0x11b   :  { %1917 = vmatprep.mubr.f32.mxu1 %v4226_v1  ;;  %2504 = vmatprep.mubr.f32.mxu0 %v4226_v1 }
 0x11e   :  { %3834 = vmatmul.mubr.msk.f32.gmra.mrb[14].mxu1 %vm65_vm2, %v4759_v12  ;;  %3869 = vmatmul.mubr.msk.f32.vlgmr.msra.gmra.mrb[0].mxu0 %vm65_vm2, %v3863_v55  ;;  %v3155_v12 = vshrl.u32 %v3150_v28, 7 }
 0x11f   :  { %2246 = vmatprep.mubr.f32.mxu1 %v4226_v1  ;;  %2510 = vmatprep.mubr.f32.mxu0 %v4226_v1 }
 0x120   :  { %3880 = vmatpush1.msk.msra.mxu0 %vm78_vm0, %v2415_v56  ;;  %v3156_v18 = vsub.s32 0, %v3155_v12  ;;  %v3160_v23 = vsub.s32 1, %v3155_v12  ;;  %v3164_v29 = vsub.s32 2, %v3155_v12  ;;  %v3168_v32 = vsub.s32 3, %v3155_v12 }
 0x121   :  { %3889 = vmatprep.subr.msk.mxu0 %vm78_vm0, %v2759_v57 }
 0x122   :  { %3853 = vmatmul.mubr.msk.f32.vlgmr.msra.gmra.mrb[8].mxu1 %vm65_vm2, %v4807_v31  ;;  %3870 = vmatmul.mubr.msk.f32.gmra.mrb[2].mxu0 %vm65_vm2, %v3864_v60  ;;  %v3907_v31 = vld [vmem:[%s5314_s3 + $0x1] ss:$2 sm:$0x3f]  ;;  %v5041_v42 = vrot.slane %v3152_v30, %v3160_v23  ;;  %v5048_v46 = vrot.slane %v3152_v30, %v3164_v29  ;;  %v5052_v48 = vrot.slane %v3152_v30, %v3168_v32 }
 0x123   :  { %3874 = vmatpush1.msk.msra.mxu1 %vm78_vm0, %v2413_v62  ;;  %2252 = vmatprep.mubr.f32.mxu1 %v4226_v1  ;;  %v5043_v43 = vrot.slane %v3907_v31, %v3156_v18  ;;  %v5045_v44 = vrot.slane %v3907_v31, %v3160_v23  ;;  %v5050_v47 = vrot.slane %v3907_v31, %v3164_v29 }
 0x124   :  { %2516 = vmatprep.mubr.f32.mxu0 %v4226_v1  ;;  %3895 = vmatprep.subr.msk.mxu1 %vm78_vm0, %v2761_v61  ;;  %v5055_v52 = vrot.slane %v3907_v31, %v3168_v32 }
 0x126   :  { %3854 = vmatmul.mubr.msk.f32.gmra.mrb[10].mxu1 %vm65_vm2, %v4822_v35  ;;  %3871 = vmatmul.mubr.msk.f32.gmra.mrb[4].mxu0 %vm65_vm2, %v3865_v63  ;;  %v3172_v35 = vsub.s32 4, %v3155_v12 }
 0x127   :  { %2258 = vmatprep.mubr.f32.mxu1 %v4226_v1  ;;  %2522 = vmatprep.mubr.f32.mxu0 %v4226_v1 }
 0x128   :  { %v5057_v53 = vrot.slane %v3152_v30, %v3172_v35  ;;  %v5059_v54 = vrot.slane %v3907_v31, %v3172_v35 }
 0x12a   :  { %3855 = vmatmul.mubr.msk.f32.gmra.mrb[12].mxu1 %vm65_vm2, %v4838_v38  ;;  %3872 = vmatmul.mubr.msk.f32.gmra.mrb[6].mxu0 %vm65_vm2, %v3866_v0  ;;  %v5037_v38 = vrot.slane %v3152_v30, %v3156_v18 }
 0x12b   :  { %2264 = vmatprep.mubr.f32.mxu1 %v4226_v1  ;;  %2682 = vmatprep.mubr.f32.mxu0 %v4226_v1 }
 0x12e   :  { %3856 = vmatmul.mubr.msk.f32.gmra.mrb[14].mxu1 %vm65_vm2, %v4851_v40  ;;  %3881 = vmatmul.mubr.msk.f32.vlgmr.msra.gmra.mrb[8].mxu0 %vm65_vm2, %v3863_v55  ;;  %v3176_v40 = vsub.s32 5, %v3155_v12 }
 0x12f   :  { %3890 = vmatpush1.msk.msra.mxu0 %vm78_vm0, %v2758_v2  ;;  %2593 = vmatprep.mubr.f32.mxu1 %v4226_v1 }
 0x130   :  { %2688 = vmatprep.mubr.f32.mxu0 %v4226_v1  ;;  %3901 = vmatprep.subr.msk.mxu0 %vm78_vm0, %v2756_v6  ;;  %v5035_v34 = vpop.permute.xlu0 %3084 }
 0x132   :  { %3875 = vmatmul.mubr.msk.f32.vlgmr.msra.gmra.mrb[8].mxu1 %vm65_vm2, %v3863_v55  ;;  %3882 = vmatmul.mubr.msk.f32.gmra.mrb[10].mxu0 %vm65_vm2, %v3864_v60 }
 0x133   :  { %3896 = vmatpush1.msk.msra.mxu1 %vm78_vm0, %v2760_v7  ;;  %2599 = vmatprep.mubr.f32.mxu1 %v4226_v1 }
 0x134   :  { %2694 = vmatprep.mubr.f32.mxu0 %v4226_v1 }
 0x136   :  { %3876 = vmatmul.mubr.msk.f32.gmra.mrb[10].mxu1 %vm65_vm2, %v3864_v60  ;;  %3883 = vmatmul.mubr.msk.f32.gmra.mrb[12].mxu0 %vm65_vm2, %v3865_v63  ;;  %v5062_v60 = vrot.slane %v3907_v31, %v3176_v40 }
 0x137   :  { %2605 = vmatprep.mubr.f32.mxu1 %v4226_v1  ;;  %2700 = vmatprep.mubr.f32.mxu0 %v4226_v1 }
 0x13a   :  { %3877 = vmatmul.mubr.msk.f32.gmra.mrb[12].mxu1 %vm65_vm2, %v3865_v63  ;;  %3884 = vmatmul.mubr.msk.f32.gmra.mrb[14].mxu0 %vm65_vm2, %v3866_v0 }
 0x13b   :  { %2611 = vmatprep.mubr.f32.mxu1 %v4226_v1  ;;  %2851 = vmatprep.mubr.f32.mxu0 %v4226_v1 }
 0x13e   :  { %3878 = vmatmul.mubr.msk.f32.gmra.mrb[14].mxu1 %vm65_vm2, %v3866_v0  ;;  %3891 = vmatmul.mubr.msk.f32.vlgmr.msra.gmra.mrb[0].mxu0 %vm65_vm2, %v3885_v8  ;;  %v5065_v0 = vrot.slane %v3152_v30, %v3176_v40 }
 0x13f   :  { %2857 = vmatprep.mubr.f32.mxu0 %v4226_v1  ;;  %2940 = vmatprep.mubr.f32.mxu1 %v4226_v1 }
 0x140   :  { %3902 = vmatpush1.msk.msra.mxu0 %vm78_vm0, %v2762_v9 }
 0x142   :  { %3892 = vmatmul.mubr.msk.f32.gmra.mrb[2].mxu0 %vm65_vm2, %v3886_v10  ;;  %3897 = vmatmul.mubr.msk.f32.vlgmr.msra.gmra.mrb[8].mxu1 %vm65_vm2, %v3885_v8 }
 0x143   :  { %2863 = vmatprep.mubr.f32.mxu0 %v4226_v1  ;;  %2946 = vmatprep.mubr.f32.mxu1 %v4226_v1 }
 0x146   :  { %3893 = vmatmul.mubr.msk.f32.gmra.mrb[4].mxu0 %vm65_vm2, %v3887_v11  ;;  %3898 = vmatmul.mubr.msk.f32.gmra.mrb[10].mxu1 %vm65_vm2, %v3886_v10 }
 0x147   :  { %2869 = vmatprep.mubr.f32.mxu0 %v4226_v1  ;;  %2952 = vmatprep.mubr.f32.mxu1 %v4226_v1 }
 0x14a   :  { %3894 = vmatmul.mubr.msk.f32.gmra.mrb[6].mxu0 %vm65_vm2, %v3888_v3  ;;  %3899 = vmatmul.mubr.msk.f32.gmra.mrb[12].mxu1 %vm65_vm2, %v3887_v11 }
 0x14b   :  { %2958 = vmatprep.mubr.f32.mxu1 %v4226_v1  ;;  %3029 = vmatprep.mubr.f32.mxu0 %v4226_v1 }
 0x14e   :  { %3900 = vmatmul.mubr.msk.f32.gmra.mrb[14].mxu1 %vm65_vm2, %v3888_v3  ;;  %3903 = vmatmul.mubr.msk.f32.vlgmr.msra.gmra.mrb[8].mxu0 %vm65_vm2, %v3885_v8 }
 0x14f   :  { %3035 = vmatprep.mubr.f32.mxu0 %v4226_v1 }
 0x152   :  { %3904 = vmatmul.mubr.msk.f32.gmra.mrb[10].mxu0 %vm65_vm2, %v3886_v10 }
 0x153   :  { %3041 = vmatprep.mubr.f32.mxu0 %v4226_v1 }
 0x156   :  { %3905 = vmatmul.mubr.msk.f32.gmra.mrb[12].mxu0 %vm65_vm2, %v3887_v11 }
 0x157   :  { %3047 = vmatprep.mubr.f32.mxu0 %v4226_v1 }
 0x15a   :  { %3906 = vmatmul.mubr.msk.f32.gmra.mrb[14].mxu0 %vm65_vm2, %v3888_v3 }
 0x177   :  { %v5039_v39 = vpop.permute.xlu1 %3089 }
 0x17b   :  { %v5070_v9 = vpop.permute.xlu1 %3094 }
 0x185   :  { %v448_v5 = vpop.f32.mrb[0].mxu1 }
 0x186   :  { %v450_v13 = vpop.f32.mrb[1].mxu1 }
 0x189   :  { %v454_v14 = vpop.f32.mrb[2].mxu1 }
 0x18a   :  { %v456_v15 = vpop.f32.mrb[3].mxu1 }
 0x18d   :  { %v5004_v16 = vpop.f32.mrb[4].mxu1 }
 0x18e   :  { %v5006_v17 = vpop.f32.mrb[5].mxu1 }
 0x191   :  { %v5008_v19 = vpop.f32.mrb[6].mxu1 }
 0x192   :  { %v5010_v4 = vpop.f32.mrb[7].mxu1 }
 0x1a5   :  { %v5012_v20 = vpop.f32.mrb[16].mxu1 }
 0x1a6   :  { %v5014_v21 = vpop.f32.mrb[17].mxu1 }
 0x1a9   :  { %v5016_v22 = vpop.f32.mrb[18].mxu1 }
 0x1aa   :  { %v5018_v1 = vpop.f32.mrb[19].mxu1 }
 0x1ad   :  { %v5020_v24 = vpop.f32.mrb[20].mxu1 }
 0x1ae   :  { %v5022_v25 = vpop.f32.mrb[21].mxu1 }
 0x1b1   :  { %v5024_v26 = vpop.f32.mrb[22].mxu1 }
 0x1b2   :  { %v5026_v27 = vpop.f32.mrb[23].mxu1 }
 0x211   :  { %v2853_v33 = vpop.f32.mrb[0].mxu0 }
 0x212   :  { %v4003_v36 = vadd.f32 %v2853_v33, %v448_v5  ;;  %v2855_v37 = vpop.f32.mrb[1].mxu0 }
 0x213   :  { %v4004_v41 = vadd.f32 %v2855_v37, %v450_v13 }
 0x214   :  { %v3102_v45 = vadd.f32 %v4003_v36, %v5035_v34 }
 0x215   :  { %v2859_v49 = vpop.f32.mrb[2].mxu0  ;;  %v2942_v50 = vpop.f32.mrb[8].mxu1  ;;  %v3103_v51 = vadd.f32 %v4004_v41, %v5035_v34 }
 0x216   :  { %v4005_v55 = vadd.f32 %v2859_v49, %v454_v14  ;;  %v3104_v56 = vadd.f32 %v5035_v34, %v2942_v50  ;;  %v3126_v57 = vmax.f32 %v3102_v45, 0.0  ;;  %v2861_v58 = vpop.f32.mrb[3].mxu0  ;;  %v2944_v59 = vpop.f32.mrb[9].mxu1 }
 0x217   :  { %v3127_v61 = vmax.f32 %v3103_v51, 0.0  ;;  %v4006_v62 = vadd.f32 %v2861_v58, %v456_v15  ;;  %v3105_v63 = vadd.f32 %v5035_v34, %v2944_v59 }
 0x218   :  { %v3128_v2 = vmax.f32 %v3104_v56, 0.0  ;;  %v3184_v6 = vmul.f32 %v5037_v38, %v3126_v57  ;;  %v3285_v7 = vmul.f32 %v5043_v43, %v3126_v57  ;;  %v3108_v8 = vadd.f32 %v4005_v55, %v5039_v39 }
 0x219   :  { %v3185_v10 = vmul.f32 %v5041_v42, %v3127_v61  ;;  %v3286_v11 = vmul.f32 %v5045_v44, %v3127_v61  ;;  %v3129_v3 = vmax.f32 %v3105_v63, 0.0  ;;  %v2865_v5 = vpop.f32.mrb[4].mxu0  ;;  %v2948_v13 = vpop.f32.mrb[10].mxu1  ;;  %v3109_v14 = vadd.f32 %v4006_v62, %v5039_v39 }
 0x21a   :  { %v3186_v15 = vmul.f32 %v5048_v46, %v3128_v2  ;;  %v3287_v12 = vmul.f32 %v5050_v47, %v3128_v2  ;;  %v4007_v18 = vadd.f32 %v2865_v5, %v5004_v16  ;;  %v3110_v30 = vadd.f32 %v5039_v39, %v2948_v13  ;;  %v2867_v23 = vpop.f32.mrb[5].mxu0  ;;  %v2950_v29 = vpop.f32.mrb[11].mxu1 }
 0x21b   :  { %v3208_v31 = vadd.f32 %v3185_v10, %v3184_v6  ;;  %v3309_v32 = vadd.f32 %v3286_v11, %v3285_v7  ;;  %v3187_v33 = vmul.f32 %v5052_v48, %v3129_v3  ;;  %v3288_v35 = vmul.f32 %v5055_v52, %v3129_v3  ;;  %v5096_v3 = vpop.permute.xlu0 %3099 }
 0x21c   :  { %v3132_v36 = vmax.f32 %v3108_v8, 0.0  ;;  %v3133_v37 = vmax.f32 %v3109_v14, 0.0  ;;  %v3134_v40 = vmax.f32 %v3110_v30, 0.0  ;;  %v4008_v41 = vadd.f32 %v2867_v23, %v5006_v17 }
 0x21d   :  { %v3209_v45 = vadd.f32 %v3208_v31, %v3186_v15  ;;  %v3310_v49 = vadd.f32 %v3309_v32, %v3287_v12  ;;  %v3111_v50 = vadd.f32 %v5039_v39, %v2950_v29  ;;  %v2871_v16 = vpop.f32.mrb[6].mxu0  ;;  %v2954_v51 = vpop.f32.mrb[12].mxu1  ;;  %v3114_v55 = vadd.f32 %v4007_v18, %v5070_v9 }
 0x21e   :  { %v3190_v56 = vmul.f32 %v5037_v38, %v3132_v36  ;;  %v3191_v57 = vmul.f32 %v5041_v42, %v3133_v37  ;;  %v3192_v58 = vmul.f32 %v5048_v46, %v3134_v40  ;;  %v3291_v59 = vmul.f32 %v5043_v43, %v3132_v36  ;;  %v2873_v61 = vpop.f32.mrb[7].mxu0  ;;  %v2956_v62 = vpop.f32.mrb[13].mxu1 }
 0x21f   :  { %v5088_v63 = vadd.f32 %v3209_v45, %v3187_v33  ;;  %v5090_v17 = vadd.f32 %v3310_v49, %v3288_v35  ;;  %v3292_v2 = vmul.f32 %v5045_v44, %v3133_v37  ;;  %v3293_v6 = vmul.f32 %v5050_v47, %v3134_v40 }
 0x220   :  { %v3217_v7 = vadd.f32 %v3191_v57, %v3190_v56  ;;  %v3135_v8 = vmax.f32 %v3111_v50, 0.0  ;;  %v4009_v10 = vadd.f32 %v2871_v16, %v5008_v19  ;;  %v3115_v11 = vadd.f32 %v4008_v41, %v5070_v9 }
 0x221   :  { %v3317_v5 = vadd.f32 %v3292_v2, %v3291_v59  ;;  %v3116_v13 = vadd.f32 %v5070_v9, %v2954_v51  ;;  %v3138_v14 = vmax.f32 %v3114_v55, 0.0  ;;  %v4010_v15 = vadd.f32 %v2873_v61, %v5010_v4  ;;  %v2960_v12 = vpop.f32.mrb[14].mxu1  ;;  %v3031_v18 = vpop.f32.mrb[8].mxu0 }
 0x222   :  { %v3218_v30 = vadd.f32 %v3217_v7, %v3192_v58  ;;  %v3193_v23 = vmul.f32 %v5052_v48, %v3135_v8  ;;  %v3294_v29 = vmul.f32 %v5055_v52, %v3135_v8  ;;  %v3139_v31 = vmax.f32 %v3115_v11, 0.0  ;;  %v2962_v32 = vpop.f32.mrb[15].mxu1  ;;  %v3033_v19 = vpop.f32.mrb[9].mxu0 }
 0x223   :  { %v3318_v33 = vadd.f32 %v3317_v5, %v3293_v6  ;;  %v3140_v35 = vmax.f32 %v3116_v13, 0.0  ;;  %v3196_v36 = vmul.f32 %v5037_v38, %v3138_v14  ;;  %v3297_v37 = vmul.f32 %v5043_v43, %v3138_v14 }
 0x224   :  { %v5104_v40 = vadd.f32 %v3218_v30, %v3193_v23  ;;  %v3197_v4 = vmul.f32 %v5041_v42, %v3139_v31  ;;  %v3298_v41 = vmul.f32 %v5045_v44, %v3139_v31  ;;  %v3117_v45 = vadd.f32 %v5070_v9, %v2956_v62 }
 0x225   :  { %v5109_v49 = vadd.f32 %v3318_v33, %v3294_v29  ;;  %v3198_v50 = vmul.f32 %v5048_v46, %v3140_v35  ;;  %v3299_v16 = vmul.f32 %v5050_v47, %v3140_v35  ;;  %v3120_v51 = vadd.f32 %v4009_v10, %v5096_v3  ;;  %v3037_v55 = vpop.f32.mrb[10].mxu0 }
 0x226   :  { %v3225_v56 = vadd.f32 %v3197_v4, %v3196_v36  ;;  %v3325_v57 = vadd.f32 %v3298_v41, %v3297_v37  ;;  %v3141_v58 = vmax.f32 %v3117_v45, 0.0  ;;  %v3121_v59 = vadd.f32 %v4010_v15, %v5096_v3  ;;  %v3039_v61 = vpop.f32.mrb[11].mxu0 }
 0x227   :  { %v3122_v2 = vadd.f32 %v5096_v3, %v2960_v12  ;;  %v3144_v6 = vmax.f32 %v3120_v51, 0.0  ;;  %v4011_v62 = vadd.f32 %v3031_v18, %v5012_v20  ;;  %v3123_v7 = vadd.f32 %v5096_v3, %v2962_v32 }
 0x228   :  { %v3226_v8 = vadd.f32 %v3225_v56, %v3198_v50  ;;  %v3326_v11 = vadd.f32 %v3325_v57, %v3299_v16  ;;  %v3199_v5 = vmul.f32 %v5052_v48, %v3141_v58  ;;  %v3300_v10 = vmul.f32 %v5055_v52, %v3141_v58 }
 0x229   :  { %v3145_v13 = vmax.f32 %v3121_v59, 0.0  ;;  %v3146_v14 = vmax.f32 %v3122_v2, 0.0  ;;  %v3202_v30 = vmul.f32 %v5037_v38, %v3144_v6  ;;  %v3303_v15 = vmul.f32 %v5043_v43, %v3144_v6  ;;  %v3043_v23 = vpop.f32.mrb[12].mxu0 }
 0x22a   :  { %v5122_v29 = vadd.f32 %v3226_v8, %v3199_v5  ;;  %v5124_v12 = vadd.f32 %v3326_v11, %v3300_v10  ;;  %v3106_v20 = vadd.f32 %v4011_v62, %v5035_v34  ;;  %v3147_v18 = vmax.f32 %v3123_v7, 0.0  ;;  %v3045_v31 = vpop.f32.mrb[13].mxu0 }
 0x22b   :  { %v3203_v32 = vmul.f32 %v5041_v42, %v3145_v13  ;;  %v3204_v33 = vmul.f32 %v5048_v46, %v3146_v14  ;;  %v3304_v35 = vmul.f32 %v5045_v44, %v3145_v13  ;;  %v3305_v38 = vmul.f32 %v5050_v47, %v3146_v14 }
 0x22c   :  { %v3130_v36 = vmax.f32 %v3106_v20, 0.0  ;;  %v3205_v43 = vmul.f32 %v5052_v48, %v3147_v18  ;;  %v3306_v37 = vmul.f32 %v5055_v52, %v3147_v18  ;;  %v4012_v4 = vadd.f32 %v3033_v19, %v5014_v21 }
 0x22d   :  { %v3233_v41 = vadd.f32 %v3203_v32, %v3202_v30  ;;  %v3333_v45 = vadd.f32 %v3304_v35, %v3303_v15  ;;  %v4013_v50 = vadd.f32 %v3037_v55, %v5016_v22  ;;  %v4014_v16 = vadd.f32 %v3039_v61, %v5018_v1  ;;  %v3049_v42 = vpop.f32.mrb[14].mxu0 }
 0x22e   :  { %v3188_v46 = vmul.f32 %v5057_v53, %v3130_v36  ;;  %v3289_v44 = vmul.f32 %v5059_v54, %v3130_v36  ;;  %v3107_v47 = vadd.f32 %v4012_v4, %v5035_v34  ;;  %v4015_v51 = vadd.f32 %v3043_v23, %v5020_v24  ;;  %v3051_v48 = vpop.f32.mrb[15].mxu0 }
 0x22f   :  { %v3234_v56 = vadd.f32 %v3233_v41, %v3204_v33  ;;  %v3334_v52 = vadd.f32 %v3333_v45, %v3305_v38  ;;  %v3112_v21 = vadd.f32 %v4013_v50, %v5039_v39  ;;  %v3113_v19 = vadd.f32 %v4014_v16, %v5039_v39 }
 0x230   :  { %v3131_v57 = vmax.f32 %v3107_v47, 0.0  ;;  %v3118_v22 = vadd.f32 %v4015_v51, %v5070_v9  ;;  %v4016_v1 = vadd.f32 %v3045_v31, %v5022_v25  ;;  %v4017_v55 = vadd.f32 %v3049_v42, %v5024_v26  ;;  %v3363_v51 = vld [vmem:[%s5315_s5 + $0x18] sm:$0xff] }
 0x231   :  { %v3235_v58 = vadd.f32 %v3234_v56, %v3205_v43  ;;  %v3335_v59 = vadd.f32 %v3334_v52, %v3306_v37  ;;  %v3136_v61 = vmax.f32 %v3112_v21, 0.0  ;;  %v3137_v34 = vmax.f32 %v3113_v19, 0.0  ;;  %v3352_v56 = vld [vmem:[%s5316_s4] sm:$0xff]  ;;  %v3365_v52 = vld [vmem:[%s5315_s5 + $0x28] sm:$0xff]  ;;  %v3366_v21 = vld [vmem:[%s5315_s5 + $0x30] sm:$0xff] }
 0x232   :  { %v3142_v2 = vmax.f32 %v3118_v22, 0.0  ;;  %v3119_v24 = vadd.f32 %v4016_v1, %v5070_v9  ;;  %v3124_v6 = vadd.f32 %v4017_v55, %v5096_v3  ;;  %v3290_v62 = vmul.f32 %v5062_v60, %v3131_v57  ;;  %3948 = vmatprep.mubr.msk.f32.mxu1 %vm3408_vm11, %v3352_v56  ;;  %v3367_v19 = vld [vmem:[%s5315_s5 + $0x38] sm:$0xff]  ;;  %v3613_v22 = vld [vmem:[%s5317_s7 + $0x8] sm:$0xff] }
 0x233   :  { %v3194_v39 = vmul.f32 %v5057_v53, %v3136_v61  ;;  %v3295_v7 = vmul.f32 %v5059_v54, %v3136_v61  ;;  %v3312_v8 = vadd.f32 %v5090_v17, %v3289_v44  ;;  %v3189_v25 = vmul.f32 %v5065_v0, %v3131_v57  ;;  %v3612_v57 = vld [vmem:[%s5317_s7] sm:$0xff] }
 0x234   :  { %v3200_v26 = vmul.f32 %v5057_v53, %v3142_v2  ;;  %v3301_v11 = vmul.f32 %v5059_v54, %v3142_v2  ;;  %v3143_v5 = vmax.f32 %v3119_v24, 0.0  ;;  %v3148_v10 = vmax.f32 %v3124_v6, 0.0 }
 0x235   :  { %v3313_v9 = vsel %vm3212_vm10, %v3290_v62, 0.0  ;;  %v3211_v13 = vadd.f32 %v5088_v63, %v3188_v46  ;;  %v3213_v14 = vsel %vm3212_vm10, %v3189_v25, 0.0  ;;  %v4018_v30 = vadd.f32 %v3051_v48, %v5026_v27  ;;  %v3364_v48 = vld [vmem:[%s5315_s5 + $0x20] sm:$0xff] }
 0x236   :  { %v3206_v15 = vmul.f32 %v5057_v53, %v3148_v10  ;;  %v3307_v17 = vmul.f32 %v5059_v54, %v3148_v10  ;;  %v3314_v23 = vadd.f32 %v3313_v9, %v3312_v8  ;;  %v3296_v20 = vmul.f32 %v5062_v60, %v3137_v34 }
 0x237   :  { %v3214_v18 = vadd.f32 %v3213_v14, %v3211_v13  ;;  %v3125_v31 = vadd.f32 %v4018_v30, %v5096_v3  ;;  %v3320_v32 = vadd.f32 %v5109_v49, %v3295_v7  ;;  %v3195_v33 = vmul.f32 %v5065_v0, %v3137_v34 }
 0x238   :  { %3315 = vadd.xlane.f32.xlu0 %v3314_v23  ;;  %v3321_v63 = vsel %vm3212_vm10, %v3296_v20, 0.0  ;;  %v3220_v35 = vadd.f32 %v5104_v40, %v3194_v39  ;;  %v3201_v27 = vmul.f32 %v5065_v0, %v3143_v5  ;;  %v3228_v53 = vadd.f32 %v5122_v29, %v3200_v26  ;;  %v3355_v23 = vld [vmem:[%s5316_s4 + $0x18] sm:$0xff]  ;;  %v3356_v20 = vld [vmem:[%s5316_s4 + $0x20] sm:$0xff] }
 0x239   :  { %3215 = vadd.xlane.f32.xlu1 %v3214_v18  ;;  %v3149_v54 = vmax.f32 %v3125_v31, 0.0  ;;  %v3322_v38 = vadd.f32 %v3321_v63, %v3320_v32  ;;  %v3221_v36 = vsel %vm3212_vm10, %v3195_v33, 0.0  ;;  %v3236_v43 = vadd.f32 %v3235_v58, %v3206_v15  ;;  %v3353_v15 = vld [vmem:[%s5316_s4 + $0x8] sm:$0xff]  ;;  %v3358_v31 = vld [vmem:[%s5316_s4 + $0x30] sm:$0xff]  ;;  %v3359_v32 = vld [vmem:[%s5316_s4 + $0x38] sm:$0xff] }
 0x23a   :  { %v3222_v3 = vadd.f32 %v3221_v36, %v3220_v35  ;;  %v3229_v49 = vsel %vm3212_vm10, %v3201_v27, 0.0  ;;  %v3302_v37 = vmul.f32 %v5062_v60, %v3143_v5  ;;  %v3328_v4 = vadd.f32 %v5124_v12, %v3301_v11  ;;  %v3362_v12 = vld [vmem:[%s5315_s5 + $0x10] sm:$0xff]  ;;  %v3357_v18 = vld [vmem:[%s5316_s4 + $0x28] sm:$0xff]  ;;  %v3610_v33 = vld [vmem:[%s5318_s6] sm:$0xff] }
 0x23b   :  { %v3230_v41 = vadd.f32 %v3229_v49, %v3228_v53  ;;  %v3207_v40 = vmul.f32 %v5065_v0, %v3149_v54  ;;  %v3308_v45 = vmul.f32 %v5062_v60, %v3149_v54  ;;  %v3336_v50 = vadd.f32 %v3335_v59, %v3307_v17  ;;  %v3361_v60 = vld [vmem:[%s5315_s5 + $0x8] sm:$0xff]  ;;  %v3360_v0 = vld [vmem:[%s5315_s5] sm:$0xff]  ;;  %v3354_v17 = vld [vmem:[%s5316_s4 + $0x10] sm:$0xff] }
 0x23c   :  { %3223 = vadd.xlane.f32.xlu0 %v3222_v3  ;;  %v3329_v29 = vsel %vm3212_vm10, %v3302_v37, 0.0  ;;  %v3151_v1 = vand.u32 127, %v3150_v28 }
 0x23d   :  { %3323 = vadd.xlane.f32.xlu1 %v3322_v38  ;;  %v3237_v16 = vsel %vm3212_vm10, %v3207_v40, 0.0  ;;  %v3330_v42 = vadd.f32 %v3329_v29, %v3328_v4  ;;  %v3337_v46 = vsel %vm3212_vm10, %v3308_v45, 0.0 }
 0x23e   :  { %v3238_v44 = vadd.f32 %v3237_v16, %v3236_v43  ;;  %v3338_v47 = vadd.f32 %v3337_v46, %v3336_v50  ;;  %vm3341_vm12 = vcmp.eq.s32.totalorder %v3151_v1, 1  ;;  %vm3241_vm13 = vcmp.eq.s32.totalorder %v3151_v1, 0 }
 0x240   :  { %3231 = vadd.xlane.f32.xlu0 %v3230_v41 }
 0x241   :  { %3239 = vadd.xlane.f32.xlu1 %v3238_v44 }
 0x244   :  { %3331 = vadd.xlane.f32.xlu0 %v3330_v42 }
 0x245   :  { %3339 = vadd.xlane.f32.xlu1 %v3338_v47 }
 0x256   :  { %3375 = vperm.xlu1 %4206, %v3361_v60  }
 0x25a   :  { %3370 = vperm.xlu0 %4205, %v3360_v0   ;;  %3380 = vperm.xlu1 %4206, %v3362_v12  }
 0x25e   :  { %3385 = vperm.xlu0 %4205, %v3363_v51   ;;  %3390 = vperm.xlu1 %4206, %v3364_v48  }
 0x262   :  { %3395 = vperm.xlu0 %4205, %v3365_v52   ;;  %3400 = vperm.xlu1 %4206, %v3366_v21  }
 0x266   :  { %3405 = vperm.xlu0 %4205, %v3367_v19   ;;  %3616 = vperm.xlu1 %4206, %v3612_v57  }
 0x26a   :  { %3621 = vperm.xlu0 %4205, %v3613_v22  }
 0x2c5   :  { %v3316_v55 = vpop.xlane.xlu0 %3315 }
 0x2c6   :  { %v3216_v58 = vpop.xlane.xlu1 %3215  ;;  %v3344_v59 = vsel %vm3341_vm12, %v3316_v55, 0.0 }
 0x2c7   :  { %v3244_v61 = vsel %vm3241_vm13, %v3216_v58, 0.0 }
 0x2c8   :  { %v3348_v62 = vadd.f32 %v3344_v59, %v3244_v61 }
 0x2c9   :  { %v3224_v34 = vpop.xlane.xlu0 %3223 }
 0x2ca   :  { %v3245_v2 = vsel %vm3241_vm13, %v3224_v34, 0.0  ;;  %v3324_v24 = vpop.xlane.xlu1 %3323 }
 0x2cb   :  { %v3345_v6 = vsel %vm3341_vm12, %v3324_v24, 0.0 }
 0x2cc   :  { %v3349_v39 = vadd.f32 %v3345_v6, %v3245_v2 }
 0x2cd   :  { %v3232_v7 = vpop.xlane.xlu0 %3231 }
 0x2ce   :  { %v3979_v8 = vpack.c.bf16 %v3349_v39, %v3348_v62  ;;  %v3240_v25 = vpop.xlane.xlu1 %3239  ;;  %v3246_v5 = vsel %vm3241_vm13, %v3232_v7, 0.0 }
 0x2cf   :  { %v3247_v10 = vsel %vm3241_vm13, %v3240_v25, 0.0 }
 0x2d0   :  { %3980 = vmatprep.subr.bf16.mxu1 %v3979_v8 }
 0x2d1   :  { %3982 = vmatpush3.bf16.msra.mxu1 %v3979_v8  ;;  %v3332_v28 = vpop.xlane.xlu0 %3331 }
 0x2d2   :  { %v3346_v26 = vsel %vm3341_vm12, %v3332_v28, 0.0  ;;  %v3340_v11 = vpop.xlane.xlu1 %3339 }
 0x2d3   :  { %v3347_v9 = vsel %vm3341_vm12, %v3340_v11, 0.0  ;;  %v3350_v13 = vadd.f32 %v3346_v26, %v3246_v5 }
 0x2d4   :  { %v3351_v14 = vadd.f32 %v3347_v9, %v3247_v10 }
 0x2d6   :  { %v3983_v30 = vpack.c.bf16 %v3351_v14, %v3350_v13  ;;  %v3376_v35 = vpop.permute.xlu1 %3375 }
 0x2d8   :  { %3984 = vmatprep.subr.bf16.mxu1 %v3983_v30 }
 0x2d9   :  { %3986 = vmatpush3.bf16.msra.mxu1 %v3983_v30  ;;  %v3371_v63 = vpop.permute.xlu0 %3370 }
 0x2da   :  { %v3381_v54 = vpop.permute.xlu1 %3380 }
 0x2dc   :  { %3949 = vmatmul.mubr.msk.f32.vlgmr.msra.gmra.mrb[24].mxu1 %vm3408_vm11, %v3353_v15 }
 0x2dd   :  { %3951 = vmatprep.mubr.msk.f32.mxu1 %vm3408_vm11, %v3354_v17  ;;  %v3386_v27 = vpop.permute.xlu0 %3385 }
 0x2de   :  { %v3391_v16 = vpop.permute.xlu1 %3390 }
 0x2e0   :  { %3952 = vmatmul.mubr.msk.f32.gmra.mrb[26].mxu1 %vm3408_vm11, %v3355_v23 }
 0x2e1   :  { %3954 = vmatprep.mubr.msk.f32.mxu1 %vm3408_vm11, %v3356_v20  ;;  %v3396_v45 = vpop.permute.xlu0 %3395 }
 0x2e2   :  { %v3401_v34 = vpop.permute.xlu1 %3400 }
 0x2e4   :  { %3955 = vmatmul.mubr.msk.f32.gmra.mrb[28].mxu1 %vm3408_vm11, %v3357_v18 }
 0x2e5   :  { %3957 = vmatprep.mubr.msk.f32.mxu1 %vm3408_vm11, %v3358_v31  ;;  %v3406_v1 = vpop.permute.xlu0 %3405 }
 0x2e8   :  { %3958 = vmatmul.mubr.msk.f32.gmra.mrb[30].mxu1 %vm3408_vm11, %v3359_v32 }
 0x2e9   :  { %3976 = vmatprep.mubr.msk.f32.mxu1 %vm3624_vm14, %v3610_v33 }
 0x3af   :  { %v3950_v53 = vpop.f32.mrb[24].mxu1 }
 0x3b0   :  { %v5252_v38 = vadd.f32 %v3950_v53, %v3376_v35  ;;  %v3499_v36 = vpop.f32.mrb[25].mxu1 }
 0x3b1   :  { %v5254_v43 = vadd.f32 %v3499_v36, %v3371_v63 }
 0x3b2   :  { %v3547_v3 = vmul.f32 0.044715, %v5252_v38  ;;  %v3539_v35 = vmul.f32 0.5, %v5252_v38 }
 0x3b3   :  { %v3546_v49 = vmul.f32 0.044715, %v5254_v43  ;;  %v3953_v37 = vpop.f32.mrb[26].mxu1 }
 0x3b4   :  { %v3555_v4 = vmul.f32 %v3547_v3, %v5252_v38  ;;  %v5259_v41 = vadd.f32 %v3953_v37, %v3386_v27  ;;  %v3509_v40 = vpop.f32.mrb[27].mxu1 }
 0x3b5   :  { %v3554_v50 = vmul.f32 %v3546_v49, %v5254_v43  ;;  %v5262_v29 = vadd.f32 %v3509_v40, %v3381_v54  ;;  %v3538_v54 = vmul.f32 0.5, %v5254_v43 }
 0x3b6   :  { %v3563_v42 = vmul.f32 %v3555_v4, %v5252_v38  ;;  %v3549_v46 = vmul.f32 0.044715, %v5259_v41  ;;  %v3541_v40 = vmul.f32 0.5, %v5259_v41 }
 0x3b7   :  { %v3562_v44 = vmul.f32 %v3554_v50, %v5254_v43  ;;  %v3548_v47 = vmul.f32 0.044715, %v5262_v29  ;;  %v3956_v60 = vpop.f32.mrb[28].mxu1 }
 0x3b8   :  { %v3557_v0 = vmul.f32 %v3549_v46, %v5259_v41  ;;  %v5269_v12 = vadd.f32 %v3956_v60, %v3396_v45  ;;  %v3519_v51 = vpop.f32.mrb[29].mxu1  ;;  %v3571_v48 = vadd.f32 %v3563_v42, %v5252_v38 }
 0x3b9   :  { %v3556_v56 = vmul.f32 %v3548_v47, %v5262_v29  ;;  %v5273_v52 = vadd.f32 %v3519_v51, %v3391_v16  ;;  %v3570_v21 = vadd.f32 %v3562_v44, %v5254_v43  ;;  %v3540_v16 = vmul.f32 0.5, %v5262_v29 }
 0x3ba   :  { %v3565_v19 = vmul.f32 %v3557_v0, %v5259_v41  ;;  %v3551_v57 = vmul.f32 0.044715, %v5269_v12  ;;  %v3579_v22 = vmul.f32 0.7978846, %v3571_v48  ;;  %v3543_v43 = vmul.f32 0.5, %v5269_v12 }
 0x3bb   :  { %v3564_v55 = vmul.f32 %v3556_v56, %v5262_v29  ;;  %v3550_v58 = vmul.f32 0.044715, %v5273_v52  ;;  %v3959_v59 = vpop.f32.mrb[30].mxu1  ;;  %v3578_v61 = vmul.f32 0.7978846, %v3570_v21  ;;  %v3542_v51 = vmul.f32 0.5, %v5273_v52 }
 0x3bc   :  { %v3559_v2 = vmul.f32 %v3551_v57, %v5269_v12  ;;  %v5281_v24 = vadd.f32 %v3959_v59, %v3406_v1  ;;  %v3529_v6 = vpop.f32.mrb[31].mxu1  ;;  %4210 = vtanh.f32 %v3579_v22  ;;  %v3573_v62 = vadd.f32 %v3565_v19, %v5259_v41 }
 0x3bd   :  { %v3558_v39 = vmul.f32 %v3550_v58, %v5273_v52  ;;  %v3530_v7 = vadd.f32 %v3529_v6, %v3401_v34  ;;  %4212 = vtanh.f32 %v3578_v61  ;;  %v3572_v8 = vadd.f32 %v3564_v55, %v5262_v29  ;;  %v3622_v61 = vpop.permute.xlu0 %3621 }
 0x3be   :  { %v3567_v25 = vmul.f32 %v3559_v2, %v5269_v12  ;;  %v3553_v28 = vmul.f32 0.044715, %v5281_v24  ;;  %v3581_v26 = vmul.f32 0.7978846, %v3573_v62  ;;  %v3545_v29 = vmul.f32 0.5, %v5281_v24  ;;  %v3617_v2 = vpop.permute.xlu1 %3616 }
 0x3bf   :  { %v3566_v11 = vmul.f32 %v3558_v39, %v5273_v52  ;;  %v3552_v5 = vmul.f32 0.044715, %v3530_v7  ;;  %v3580_v10 = vmul.f32 0.7978846, %v3572_v8  ;;  %v3544_v1 = vmul.f32 0.5, %v3530_v7 }
 0x3c0   :  { %v3561_v9 = vmul.f32 %v3553_v28, %v5281_v24  ;;  %4214 = vtanh.f32 %v3581_v26  ;;  %v3575_v13 = vadd.f32 %v3567_v25, %v5269_v12 }
 0x3c1   :  { %v3560_v14 = vmul.f32 %v3552_v5, %v3530_v7  ;;  %4216 = vtanh.f32 %v3580_v10  ;;  %v3574_v30 = vadd.f32 %v3566_v11, %v5273_v52  ;;  %v3611_v52 = vld [vmem:[%s5318_s6 + $0x8] sm:$0xff] }
 0x3c2   :  { %v3569_v15 = vmul.f32 %v3561_v9, %v5281_v24  ;;  %v3583_v17 = vmul.f32 0.7978846, %v3575_v13 }
 0x3c3   :  { %v3568_v23 = vmul.f32 %v3560_v14, %v3530_v7  ;;  %v3582_v20 = vmul.f32 0.7978846, %v3574_v30 }
 0x3c4   :  { %4218 = vtanh.f32 %v3583_v17  ;;  %v3577_v18 = vadd.f32 %v3569_v15, %v5281_v24 }
 0x3c5   :  { %4220 = vtanh.f32 %v3582_v20  ;;  %v3576_v31 = vadd.f32 %v3568_v23, %v3530_v7 }
 0x3c6   :  { %v4211_v32 = vpop.eup %4210  ;;  %v3585_v33 = vmul.f32 0.7978846, %v3577_v18 }
 0x3c7   :  { %v4213_v63 = vpop.eup %4212  ;;  %v3595_v27 = vadd.f32 1.0, %v4211_v32  ;;  %v3584_v53 = vmul.f32 0.7978846, %v3576_v31 }
 0x3c8   :  { %v3594_v36 = vadd.f32 1.0, %v4213_v63  ;;  %4222 = vtanh.f32 %v3585_v33 }
 0x3c9   :  { %v3603_v3 = vmul.f32 %v3595_v27, %v3539_v35  ;;  %4224 = vtanh.f32 %v3584_v53 }
 0x3ca   :  { %v4215_v49 = vpop.eup %4214  ;;  %v3602_v37 = vmul.f32 %v3594_v36, %v3538_v54 }
 0x3cb   :  { %v4217_v4 = vpop.eup %4216  ;;  %v3597_v45 = vadd.f32 1.0, %v4215_v49 }
 0x3cc   :  { %v3987_v50 = vpack.c.bf16 %v3603_v3, %v3602_v37  ;;  %v3596_v42 = vadd.f32 1.0, %v4217_v4 }
 0x3cd   :  { %v3605_v46 = vmul.f32 %v3597_v45, %v3541_v40 }
 0x3ce   :  { %v4219_v38 = vpop.eup %4218  ;;  %3988 = vmatprep.subr.bf16.mxu1 %v3987_v50  ;;  %v3604_v44 = vmul.f32 %v3596_v42, %v3540_v16 }
 0x3cf   :  { %v4221_v47 = vpop.eup %4220  ;;  %3990 = vmatpush3.bf16.msra.mxu1 %v3987_v50  ;;  %v3599_v60 = vadd.f32 1.0, %v4219_v38 }
 0x3d0   :  { %v3991_v0 = vpack.c.bf16 %v3605_v46, %v3604_v44  ;;  %v3598_v48 = vadd.f32 1.0, %v4221_v47 }
 0x3d1   :  { %v3607_v56 = vmul.f32 %v3599_v60, %v3543_v43 }
 0x3d2   :  { %v4223_v41 = vpop.eup %4222  ;;  %3992 = vmatprep.subr.bf16.mxu1 %v3991_v0  ;;  %v3606_v21 = vmul.f32 %v3598_v48, %v3542_v51 }
 0x3d3   :  { %v4225_v19 = vpop.eup %4224  ;;  %3994 = vmatpush3.bf16.msra.mxu1 %v3991_v0  ;;  %v3601_v57 = vadd.f32 1.0, %v4223_v41 }
 0x3d4   :  { %v3995_v22 = vpack.c.bf16 %v3607_v56, %v3606_v21  ;;  %v3600_v55 = vadd.f32 1.0, %v4225_v19 }
 0x3d5   :  { %v3609_v58 = vmul.f32 %v3601_v57, %v3545_v29 }
 0x3d6   :  { %3996 = vmatprep.subr.bf16.mxu1 %v3995_v22  ;;  %v3608_v12 = vmul.f32 %v3600_v55, %v3544_v1 }
 0x3d7   :  { %3998 = vmatpush3.bf16.msra.mxu1 %v3995_v22 }
 0x3d8   :  { %v3999_v59 = vpack.c.bf16 %v3609_v58, %v3608_v12 }
 0x3da   :  { %4000 = vmatprep.subr.bf16.mxu1 %v3999_v59 }
 0x3db   :  { %4002 = vmatpush3.bf16.msra.mxu1 %v3999_v59 }
 0x3de   :  { %3977 = vmatmul.mubr.msk.f32.vlgmr.msra.gmra.mrb[32].mxu1 %vm3624_vm14, %v3611_v52 }
 0x4b1   :  { %v3978_v34 = vpop.f32.mrb[32].mxu1 }
 0x4b2   :  { %v3703_v24 = vadd.f32 %v3978_v34, %v3622_v61  ;;  %v3697_v6 = vpop.f32.mrb[33].mxu1 }
 0x4b3   :  { %v3698_v62 = vadd.f32 %v3697_v6, %v3617_v2 }
 0x4b4   :  { %3708 = vst.msk [vmem:[%s5319_s8 + $0x8] sm:$0xff] %vm3706_vm15, %v3703_v24 }
 0x4b5   :  { %3707 = vst.msk [vmem:[%s5319_s8] sm:$0xff] %vm3706_vm15, %v3698_v62 }

</bundles_post_ra>
